<compile_context>
chip_gen: v7x
topology: tpu7x:2x2x1
jax: 0.10.0
libtpu: 0.0.40
codegen_flags: <defaults>
</compile_context>

<pallas_src>
import functools

import jax
import jax.numpy as jnp
from jax.experimental import pallas as pl
from jax.experimental.pallas import tpu as pltpu


# ---------------------------------------------------------------------------
# Tiling helper
# ---------------------------------------------------------------------------

def _pick_tile(dim, target, align):
    """Largest tile <= target that is a multiple of `align` and divides `dim`.
    Falls back to the full dim (always legal for a BlockSpec)."""
    if dim <= target:
        return dim
    t = (target // align) * align
    while t >= align:
        if dim % t == 0:
            return t
        t -= align
    return dim


# ---------------------------------------------------------------------------
# Pallas kernels
# ---------------------------------------------------------------------------

def _ln_matmul_kernel(x_ref, g_ref, b_ref, w_ref, wb_ref, o_ref):
    """Fused LayerNorm(x) @ W + bias.  Grid (M//tm, N//tn); full-D contraction."""
    x = x_ref[...].astype(jnp.float32)
    mu = jnp.mean(x, axis=-1, keepdims=True)
    var = jnp.mean(jnp.square(x - mu), axis=-1, keepdims=True)
    xn = (x - mu) * jax.lax.rsqrt(var + 1e-5) * g_ref[...] + b_ref[...]
    y = jnp.dot(xn.astype(jnp.bfloat16), w_ref[...],
                preferred_element_type=jnp.float32)
    o_ref[...] = (y + wb_ref[...]).astype(o_ref.dtype)


def _matmul_kernel(x_ref, w_ref, b_ref, o_ref, acc_ref):
    """x @ W + bias, tiled over (M, N, K) with f32 VMEM accumulator."""
    @pl.when(pl.program_id(2) == 0)
    def _():
        acc_ref[...] = jnp.zeros_like(acc_ref)

    acc_ref[...] += jnp.dot(x_ref[...].astype(jnp.bfloat16), w_ref[...],
                            preferred_element_type=jnp.float32)

    @pl.when(pl.program_id(2) == pl.num_programs(2) - 1)
    def _():
        o_ref[...] = (acc_ref[...] + b_ref[...]).astype(o_ref.dtype)


def _matmul_resid_kernel(x_ref, w_ref, b_ref, r_ref, o_ref, acc_ref):
    """x @ W + bias + residual (fused residual add), same tiling as _matmul_kernel."""
    @pl.when(pl.program_id(2) == 0)
    def _():
        acc_ref[...] = jnp.zeros_like(acc_ref)

    acc_ref[...] += jnp.dot(x_ref[...].astype(jnp.bfloat16), w_ref[...],
                            preferred_element_type=jnp.float32)

    @pl.when(pl.program_id(2) == pl.num_programs(2) - 1)
    def _():
        o_ref[...] = (acc_ref[...] + b_ref[...] + r_ref[...]).astype(o_ref.dtype)


def _ln_ffn_kernel(x_ref, g_ref, b_ref, w1_ref, b1_ref, w2_ref, b2_ref,
                   o_ref, acc_ref):
    """Fused LayerNorm + FFN (relu) + residual, tiled over the filter dim F."""
    f = pl.program_id(1)

    @pl.when(f == 0)
    def _():
        acc_ref[...] = jnp.zeros_like(acc_ref)

    x = x_ref[...].astype(jnp.float32)
    mu = jnp.mean(x, axis=-1, keepdims=True)
    var = jnp.mean(jnp.square(x - mu), axis=-1, keepdims=True)
    xn = (x - mu) * jax.lax.rsqrt(var + 1e-5) * g_ref[...] + b_ref[...]

    h = jnp.dot(xn.astype(jnp.bfloat16), w1_ref[...],
                preferred_element_type=jnp.float32) + b1_ref[...]
    h = jnp.maximum(h, 0.0)  # ReLU
    # TODO(synk): dropout_relu skipped (inference semantics)
    acc_ref[...] += jnp.dot(h.astype(jnp.bfloat16), w2_ref[...],
                            preferred_element_type=jnp.float32)

    @pl.when(f == pl.num_programs(1) - 1)
    def _():
        o_ref[...] = (acc_ref[...] + b2_ref[...] + x).astype(o_ref.dtype)


def _attn_body(q_ref, k_ref, v_ref, o_ref, w_ref, bias):
    """Scaled dot-product attention for one batch item, all heads at once."""
    dh = q_ref.shape[-1]
    scale = float(dh) ** -0.5
    q = (q_ref[0].astype(jnp.float32) * scale).astype(jnp.bfloat16)   # (H, Sq, dh)
    k = k_ref[0].astype(jnp.bfloat16)                                  # (H, Sk, dh)
    v = v_ref[0].astype(jnp.bfloat16)                                  # (H, Sk, dh)

    logits = jnp.einsum("hqd,hkd->hqk", q, k,
                        preferred_element_type=jnp.float32)            # (H, Sq, Sk)
    if bias is not None:
        logits = logits + bias                                         # bias: (1, Sq, Sk)

    m = jnp.max(logits, axis=-1, keepdims=True)
    e = jnp.exp(logits - m)
    p = e * pl.reciprocal(jnp.sum(e, axis=-1, keepdims=True), approx=True)
    # TODO(synk): attention dropout skipped (inference semantics)
    w_ref[0] = p.astype(w_ref.dtype)
    ctx = jnp.einsum("hqk,hkd->hqd", p.astype(jnp.bfloat16), v,
                     preferred_element_type=jnp.float32)
    o_ref[0] = ctx.astype(o_ref.dtype)


def _attn_kernel(q_ref, k_ref, v_ref, o_ref, w_ref):
    _attn_body(q_ref, k_ref, v_ref, o_ref, w_ref, None)


def _attn_bias_kernel(q_ref, k_ref, v_ref, bias_ref, o_ref, w_ref):
    _attn_body(q_ref, k_ref, v_ref, o_ref, w_ref, bias_ref[0])


# ---------------------------------------------------------------------------
# pallas_call wrappers
# ---------------------------------------------------------------------------

def ln_matmul(x2d, gamma, beta, w_bf16, bias):
    """LayerNorm(x2d) @ w + bias, tiled over (M, N)."""
    M, D = x2d.shape
    N = w_bf16.shape[1]
    tm = _pick_tile(M, 256, 8)
    tn = _pick_tile(N, 512, 128)
    return pl.pallas_call(
        _ln_matmul_kernel,
        grid=(M // tm, N // tn),
        in_specs=[pl.BlockSpec((tm, D), lambda i, j: (i, 0)),
                  pl.BlockSpec((1, D), lambda i, j: (0, 0)),
                  pl.BlockSpec((1, D), lambda i, j: (0, 0)),
                  pl.BlockSpec((D, tn), lambda i, j: (0, j)),
                  pl.BlockSpec((1, tn), lambda i, j: (0, j))],
        out_specs=pl.BlockSpec((tm, tn), lambda i, j: (i, j)),
        out_shape=jax.ShapeDtypeStruct((M, N), jnp.float32),
        compiler_params=pltpu.CompilerParams(
            dimension_semantics=("parallel", "parallel")),
    )(x2d, gamma.reshape(1, D), beta.reshape(1, D), w_bf16, bias.reshape(1, N))


def matmul_bias(x2d, w_bf16, bias, resid=None):
    """x2d @ w + bias (+ resid), tiled over (M, N, K) with an accumulator."""
    M, K = x2d.shape
    N = w_bf16.shape[1]
    tm = _pick_tile(M, 256, 8)
    tn = _pick_tile(N, 512, 128)
    tk = _pick_tile(K, 512, 128)

    in_specs = [pl.BlockSpec((tm, tk), lambda i, j, k: (i, k)),
                pl.BlockSpec((tk, tn), lambda i, j, k: (k, j)),
                pl.BlockSpec((1, tn), lambda i, j, k: (0, j))]
    args = [x2d, w_bf16, bias.reshape(1, N)]
    if resid is not None:
        in_specs.append(pl.BlockSpec((tm, tn), lambda i, j, k: (i, j)))
        args.append(resid)
        kernel = _matmul_resid_kernel
    else:
        kernel = _matmul_kernel

    return pl.pallas_call(
        kernel,
        grid=(M // tm, N // tn, K // tk),
        in_specs=in_specs,
        out_specs=pl.BlockSpec((tm, tn), lambda i, j, k: (i, j)),
        out_shape=jax.ShapeDtypeStruct((M, N), jnp.float32),
        scratch_shapes=[pltpu.VMEM((tm, tn), jnp.float32)],
        compiler_params=pltpu.CompilerParams(
            dimension_semantics=("parallel", "parallel", "arbitrary")),
    )(*args)


def ln_ffn_residual(x2d, gamma, beta, w1_bf16, b1, w2_bf16, b2):
    """LayerNorm + FFN + residual fused; filter dim F tiled with an accumulator."""
    M, D = x2d.shape
    F = w1_bf16.shape[1]
    tm = _pick_tile(M, 256, 8)
    tf = _pick_tile(F, 512, 128)
    return pl.pallas_call(
        _ln_ffn_kernel,
        grid=(M // tm, F // tf),
        in_specs=[pl.BlockSpec((tm, D), lambda i, f: (i, 0)),
                  pl.BlockSpec((1, D), lambda i, f: (0, 0)),
                  pl.BlockSpec((1, D), lambda i, f: (0, 0)),
                  pl.BlockSpec((D, tf), lambda i, f: (0, f)),
                  pl.BlockSpec((1, tf), lambda i, f: (0, f)),
                  pl.BlockSpec((tf, D), lambda i, f: (f, 0)),
                  pl.BlockSpec((1, D), lambda i, f: (0, 0))],
        out_specs=pl.BlockSpec((tm, D), lambda i, f: (i, 0)),
        out_shape=jax.ShapeDtypeStruct((M, D), jnp.float32),
        scratch_shapes=[pltpu.VMEM((tm, D), jnp.float32)],
        compiler_params=pltpu.CompilerParams(
            dimension_semantics=("parallel", "arbitrary")),
    )(x2d, gamma.reshape(1, D), beta.reshape(1, D),
      w1_bf16, b1.reshape(1, F), w2_bf16, b2.reshape(1, D))


def mha_core(q2d, k2d, v2d, bias, B, Sq, Sk, n_heads):
    """Attention over (B,) grid with all heads per block.  Returns ctx2d, weights."""
    D = q2d.shape[-1]
    dh = D // n_heads

    # TODO(synk): head split/merge transposes done in XLA glue; could be folded into
    # the projection kernels' output layout for a further HBM-pass saving.
    def to_heads(t2d, S):
        return t2d.reshape(B, S, n_heads, dh).transpose(0, 2, 1, 3)   # (B, H, S, dh)

    q = to_heads(q2d, Sq)
    k = to_heads(k2d, Sk)
    v = to_heads(v2d, Sk)

    qkv_specs = [pl.BlockSpec((1, n_heads, Sq, dh), lambda b: (b, 0, 0, 0)),
                 pl.BlockSpec((1, n_heads, Sk, dh), lambda b: (b, 0, 0, 0)),
                 pl.BlockSpec((1, n_heads, Sk, dh), lambda b: (b, 0, 0, 0))]
    out_specs = (pl.BlockSpec((1, n_heads, Sq, dh), lambda b: (b, 0, 0, 0)),
                 pl.BlockSpec((1, n_heads, Sq, Sk), lambda b: (b, 0, 0, 0)))
    out_shape = (jax.ShapeDtypeStruct((B, n_heads, Sq, dh), jnp.float32),
                 jax.ShapeDtypeStruct((B, n_heads, Sq, Sk), jnp.float32))
    cparams = pltpu.CompilerParams(dimension_semantics=("parallel",))

    if bias is None:
        ctx, w = pl.pallas_call(
            _attn_kernel, grid=(B,), in_specs=qkv_specs,
            out_specs=out_specs, out_shape=out_shape, compiler_params=cparams,
        )(q, k, v)
    else:
        b4 = bias.astype(jnp.float32)
        while b4.ndim < 4:
            b4 = b4[None]
        Bb = b4.shape[0]
        # Heads share the bias; keep a single (Bb, 1, Sq, Sk) copy (no B*H blow-up).
        b4 = jnp.broadcast_to(b4, (Bb, 1, Sq, Sk))
        bmap = (lambda b: (b, 0, 0, 0)) if Bb == B else (lambda b: (0, 0, 0, 0))
        ctx, w = pl.pallas_call(
            _attn_bias_kernel, grid=(B,),
            in_specs=qkv_specs + [pl.BlockSpec((1, 1, Sq, Sk), bmap)],
            out_specs=out_specs, out_shape=out_shape, compiler_params=cparams,
        )(q, k, v, b4)

    ctx2d = ctx.transpose(0, 2, 1, 3).reshape(B * Sq, D)
    return ctx2d, w


# ---------------------------------------------------------------------------
# Module-level composition (glue in plain JAX, compute in Pallas)
# ---------------------------------------------------------------------------

def decoder_layer(pp, x, memory, self_bias=None, memory_bias=None, *, n_heads):
    B, S, D = x.shape
    _, Sm, _ = memory.shape
    x2d = x.reshape(B * S, D)
    mem2d = memory.reshape(B * Sm, D)

    # --- self attention sublayer (fused pre-LN + QKV projection) ---
    qkv = ln_matmul(x2d, pp["ln1_g"], pp["ln1_b"], pp["self_wqkv"], pp["self_bqkv"])
    q2d, k2d, v2d = qkv[:, :D], qkv[:, D:2 * D], qkv[:, 2 * D:]
    ctx2d, weights_self = mha_core(q2d, k2d, v2d, self_bias, B, S, S, n_heads)
    # output projection with fused residual add (dropout_postprocess = identity at inference)
    x2d = matmul_bias(ctx2d, pp["self_wo"], pp["self_bo"], resid=x2d)

    # --- cross attention sublayer ---
    q2d = ln_matmul(x2d, pp["ln2_g"], pp["ln2_b"], pp["cross_wq"], pp["cross_bq"])
    kv = matmul_bias(mem2d, pp["cross_wkv"], pp["cross_bkv"])
    k2d, v2d = kv[:, :D], kv[:, D:]
    ctx2d, weights_cross = mha_core(q2d, k2d, v2d, memory_bias, B, S, Sm, n_heads)
    x2d = matmul_bias(ctx2d, pp["cross_wo"], pp["cross_bo"], resid=x2d)

    # --- feed-forward sublayer (fused pre-LN + FFN + residual) ---
    x2d = ln_ffn_residual(x2d, pp["ln3_g"], pp["ln3_b"],
                          pp["ffn_w1"], pp["ffn_b1"], pp["ffn_w2"], pp["ffn_b2"])

    return x2d.reshape(B, S, D), (weights_self, weights_cross)


# ---------------------------------------------------------------------------
# Parameter init / preparation
# ---------------------------------------------------------------------------

def init_params(key, hidden_dim, filter_size):
    D, F = hidden_dim, filter_size
    keys = jax.random.split(key, 16)

    def mha_params(ks):
        return {
            "wq": jax.random.normal(ks[0], (D, D), jnp.float32) * 0.02,
            "bq": jnp.zeros((D,), jnp.float32),
            "wk": jax.random.normal(ks[1], (D, D), jnp.float32) * 0.02,
            "bk": jnp.zeros((D,), jnp.float32),
            "wv": jax.random.normal(ks[2], (D, D), jnp.float32) * 0.02,
            "bv": jnp.zeros((D,), jnp.float32),
            "wo": jax.random.normal(ks[3], (D, D), jnp.float32) * 0.02,
            "bo": jnp.zeros((D,), jnp.float32),
        }

    return {
        "ln1_g": jnp.ones((D,), jnp.float32), "ln1_b": jnp.zeros((D,), jnp.float32),
        "ln2_g": jnp.ones((D,), jnp.float32), "ln2_b": jnp.zeros((D,), jnp.float32),
        "ln3_g": jnp.ones((D,), jnp.float32), "ln3_b": jnp.zeros((D,), jnp.float32),
        "self_att": mha_params(keys[0:4]),
        "cross_att": mha_params(keys[4:8]),
        "ffn_w1": jax.random.normal(keys[8], (D, F), jnp.float32) * 0.02,
        "ffn_b1": jnp.zeros((F,), jnp.float32),
        "ffn_w2": jax.random.normal(keys[9], (F, D), jnp.float32) * 0.02,
        "ffn_b2": jnp.zeros((D,), jnp.float32),
    }


def prepare_params(p):
    """One-time fusion of Q/K/V weights and cast of matmul weights to bf16."""
    sa, ca = p["self_att"], p["cross_att"]
    return {
        "ln1_g": p["ln1_g"], "ln1_b": p["ln1_b"],
        "ln2_g": p["ln2_g"], "ln2_b": p["ln2_b"],
        "ln3_g": p["ln3_g"], "ln3_b": p["ln3_b"],
        "self_wqkv": jnp.concatenate([sa["wq"], sa["wk"], sa["wv"]], axis=1).astype(jnp.bfloat16),
        "self_bqkv": jnp.concatenate([sa["bq"], sa["bk"], sa["bv"]], axis=0),
        "self_wo": sa["wo"].astype(jnp.bfloat16), "self_bo": sa["bo"],
        "cross_wq": ca["wq"].astype(jnp.bfloat16), "cross_bq": ca["bq"],
        "cross_wkv": jnp.concatenate([ca["wk"], ca["wv"]], axis=1).astype(jnp.bfloat16),
        "cross_bkv": jnp.concatenate([ca["bk"], ca["bv"]], axis=0),
        "cross_wo": ca["wo"].astype(jnp.bfloat16), "cross_bo": ca["bo"],
        "ffn_w1": p["ffn_w1"].astype(jnp.bfloat16), "ffn_b1": p["ffn_b1"],
        "ffn_w2": p["ffn_w2"].astype(jnp.bfloat16), "ffn_b2": p["ffn_b2"],
    }


# ---------------------------------------------------------------------------
# Main
# ---------------------------------------------------------------------------

if __name__ == "__main__":
    B, S, Sm = 2, 8, 8          # batch, target seq, memory seq
    D, H, F = 32, 4, 64         # hidden_dim, n_heads, filter_size

    key = jax.random.PRNGKey(0)
    kx, km, kp = jax.random.split(key, 3)

    x = jax.random.normal(kx, (B, S, D), jnp.float32)
    memory = jax.random.normal(km, (B, Sm, D), jnp.float32)

    # causal self-attention bias: (1, 1, S, S) with -1e9 above the diagonal
    causal = jnp.triu(jnp.full((S, S), -1e9, jnp.float32), k=1)
    self_bias = causal[None, None, :, :]
    memory_bias = None

    params = init_params(kp, D, F)
    pp = prepare_params(params)

    fwd = jax.jit(functools.partial(decoder_layer, n_heads=H))
    out, (w_self, w_cross) = fwd(pp, x, memory, self_bias, memory_bias)

    jax.block_until_ready(out)
    jax.block_until_ready(w_self)
    jax.block_until_ready(w_cross)

    assert out.shape == (B, S, D)
    assert w_self.shape == (B, H, S, S)
    assert w_cross.shape == (B, H, S, Sm)
    print("KERNEL_OK")
</pallas_src>

<mosaic_0001>
module attributes {stable_mosaic.version = 11 : i64} {
  func.func @_ln_matmul_kernel(%arg0: i32, %arg1: i32, %arg2: memref<16x32xf32, #tpu.memory_space<vmem>>, %arg3: memref<1x32xf32, #tpu.memory_space<vmem>>, %arg4: memref<1x32xf32, #tpu.memory_space<vmem>>, %arg5: memref<32x96xbf16, #tpu.memory_space<vmem>>, %arg6: memref<1x96xf32, #tpu.memory_space<vmem>>, %arg7: memref<16x96xf32, #tpu.memory_space<vmem>>) attributes {dimension_semantics = [#tpu.dimension_semantics<parallel>, #tpu.dimension_semantics<parallel>], iteration_bounds = array<i64: 1, 1>, scalar_prefetch = 0 : i64, scratch_operands = 0 : i64, tpu.core_type = #tpu.core_type<tc>, window_params = [{transform_indices = @transform_0, window_bounds = array<i64: 16, 32>}, {pipeline_mode = #tpu.pipeline_mode<synchronous>, transform_indices = @transform_1, window_bounds = array<i64: 1, 32>}, {pipeline_mode = #tpu.pipeline_mode<synchronous>, transform_indices = @transform_2, window_bounds = array<i64: 1, 32>}, {transform_indices = @transform_3, window_bounds = array<i64: 32, 96>}, {transform_indices = @transform_4, window_bounds = array<i64: 1, 96>}, {transform_indices = @transform_5, window_bounds = array<i64: 16, 96>}]} {
    %c0 = arith.constant 0 : index
    %c0_0 = arith.constant 0 : index
    %0 = vector.load %arg2[%c0, %c0_0] : memref<16x32xf32, #tpu.memory_space<vmem>>, vector<16x32xf32>
    %cst = arith.constant dense<0.000000e+00> : vector<16xf32>
    %1 = vector.multi_reduction <add>, %0, %cst [1] : vector<16x32xf32> to vector<16xf32>
    %2 = vector.shape_cast %1 : vector<16xf32> to vector<16x1xf32>
    %cst_1 = arith.constant 3.200000e+01 : f32
    %3 = vector.broadcast %cst_1 : f32 to vector<16x1xf32>
    %4 = arith.divf %2, %3 : vector<16x1xf32>
    %5 = vector.broadcast %4 : vector<16x1xf32> to vector<16x32xf32>
    %6 = arith.subf %0, %5 : vector<16x32xf32>
    %7 = arith.mulf %6, %6 : vector<16x32xf32>
    %cst_2 = arith.constant dense<0.000000e+00> : vector<16xf32>
    %8 = vector.multi_reduction <add>, %7, %cst_2 [1] : vector<16x32xf32> to vector<16xf32>
    %9 = vector.shape_cast %8 : vector<16xf32> to vector<16x1xf32>
    %cst_3 = arith.constant 3.200000e+01 : f32
    %10 = vector.broadcast %cst_3 : f32 to vector<16x1xf32>
    %11 = arith.divf %9, %10 : vector<16x1xf32>
    %12 = vector.broadcast %4 : vector<16x1xf32> to vector<16x32xf32>
    %13 = arith.subf %0, %12 : vector<16x32xf32>
    %cst_4 = arith.constant 9.99999974E-6 : f32
    %14 = vector.broadcast %cst_4 : f32 to vector<16x1xf32>
    %15 = arith.addf %11, %14 : vector<16x1xf32>
    %16 = math.rsqrt %15 : vector<16x1xf32>
    %17 = vector.broadcast %16 : vector<16x1xf32> to vector<16x32xf32>
    %18 = arith.mulf %13, %17 : vector<16x32xf32>
    %c0_5 = arith.constant 0 : index
    %c0_6 = arith.constant 0 : index
    %19 = vector.load %arg3[%c0_5, %c0_6] : memref<1x32xf32, #tpu.memory_space<vmem>>, vector<1x32xf32>
    %20 = vector.broadcast %19 : vector<1x32xf32> to vector<16x32xf32>
    %21 = arith.mulf %18, %20 : vector<16x32xf32>
    %c0_7 = arith.constant 0 : index
    %c0_8 = arith.constant 0 : index
    %22 = vector.load %arg4[%c0_7, %c0_8] : memref<1x32xf32, #tpu.memory_space<vmem>>, vector<1x32xf32>
    %23 = vector.broadcast %22 : vector<1x32xf32> to vector<16x32xf32>
    %24 = arith.addf %21, %23 : vector<16x32xf32>
    %25 = arith.truncf %24 : vector<16x32xf32> to vector<16x32xbf16>
    %c0_9 = arith.constant 0 : index
    %c0_10 = arith.constant 0 : index
    %26 = vector.load %arg5[%c0_9, %c0_10] : memref<32x96xbf16, #tpu.memory_space<vmem>>, vector<32x96xbf16>
    %cst_11 = arith.constant dense<0.000000e+00> : vector<16x96xf32>
    %27 = tpu.matmul %25, %26, %cst_11 {dimension_numbers = #tpu.dot_dimension_numbers<[1], [0], [0], [1], [0, 0, 1, 1], [], []>} : vector<16x32xbf16>, vector<32x96xbf16>, vector<16x96xf32> -> vector<16x96xf32>
    %c0_12 = arith.constant 0 : index
    %c0_13 = arith.constant 0 : index
    %28 = vector.load %arg6[%c0_12, %c0_13] : memref<1x96xf32, #tpu.memory_space<vmem>>, vector<1x96xf32>
    %29 = vector.broadcast %28 : vector<1x96xf32> to vector<16x96xf32>
    %30 = arith.addf %27, %29 : vector<16x96xf32>
    %c0_14 = arith.constant 0 : index
    %c0_15 = arith.constant 0 : index
    %31 = vector.load %arg7[%c0_14, %c0_15] : memref<16x96xf32, #tpu.memory_space<vmem>>, vector<16x96xf32>
    tpu.vector_store %arg7[%c0_14, %c0_15], %30 {strides = array<i32>} : memref<16x96xf32, #tpu.memory_space<vmem>>, vector<16x96xf32>,
    return
  }
  func.func @transform_0(%arg0: i32, %arg1: i32) -> (i32, i32) {
    %c0_i32 = arith.constant 0 : i32
    %c0_i32_0 = arith.constant 0 : i32
    return %arg0, %c0_i32 : i32, i32
  }
  func.func @transform_1(%arg0: i32, %arg1: i32) -> (i32, i32) {
    %c0_i32 = arith.constant 0 : i32
    %c0_i32_0 = arith.constant 0 : i32
    %c0_i32_1 = arith.constant 0 : i32
    return %c0_i32, %c0_i32_0 : i32, i32
  }
  func.func @transform_2(%arg0: i32, %arg1: i32) -> (i32, i32) {
    %c0_i32 = arith.constant 0 : i32
    %c0_i32_0 = arith.constant 0 : i32
    %c0_i32_1 = arith.constant 0 : i32
    return %c0_i32, %c0_i32_0 : i32, i32
  }
  func.func @transform_3(%arg0: i32, %arg1: i32) -> (i32, i32) {
    %c0_i32 = arith.constant 0 : i32
    %c0_i32_0 = arith.constant 0 : i32
    return %c0_i32, %arg1 : i32, i32
  }
  func.func @transform_4(%arg0: i32, %arg1: i32) -> (i32, i32) {
    %c0_i32 = arith.constant 0 : i32
    %c0_i32_0 = arith.constant 0 : i32
    return %c0_i32, %arg1 : i32, i32
  }
  func.func @transform_5(%arg0: i32, %arg1: i32) -> (i32, i32) {
    %c0_i32 = arith.constant 0 : i32
    return %arg0, %arg1 : i32, i32
  }
}

module attributes {stable_mosaic.version = 11 : i64} {
  func.func @_matmul_resid_kernel(%arg0: i32, %arg1: i32, %arg2: i32, %arg3: memref<16x32xf32, #tpu.memory_space<vmem>>, %arg4: memref<32x32xbf16, #tpu.memory_space<vmem>>, %arg5: memref<1x32xf32, #tpu.memory_space<vmem>>, %arg6: memref<16x32xf32, #tpu.memory_space<vmem>>, %arg7: memref<16x32xf32, #tpu.memory_space<vmem>>, %arg8: memref<16x32xf32, #tpu.memory_space<vmem>>) attributes {dimension_semantics = [#tpu.dimension_semantics<parallel>, #tpu.dimension_semantics<parallel>, #tpu.dimension_semantics<arbitrary>], iteration_bounds = array<i64: 1, 1, 1>, scalar_prefetch = 0 : i64, scratch_operands = 1 : i64, tpu.core_type = #tpu.core_type<tc>, window_params = [{transform_indices = @transform_0, window_bounds = array<i64: 16, 32>}, {transform_indices = @transform_1, window_bounds = array<i64: 32, 32>}, {transform_indices = @transform_2, window_bounds = array<i64: 1, 32>}, {transform_indices = @transform_3, window_bounds = array<i64: 16, 32>}, {transform_indices = @transform_4, window_bounds = array<i64: 16, 32>}]} {
    %c0_i32 = arith.constant 0 : i32
    %0 = arith.cmpi eq, %arg2, %c0_i32 : i32
    %1 = arith.extui %0 : i1 to i32
    %c0_i32_0 = arith.constant 0 : i32
    %2 = arith.cmpi ne, %1, %c0_i32_0 : i32
    scf.if %2 {
      %cst_10 = arith.constant 0.000000e+00 : f32
      %13 = vector.broadcast %cst_10 : f32 to vector<16x32xf32>
      %c0_11 = arith.constant 0 : index
      %c0_12 = arith.constant 0 : index
      %14 = vector.load %arg8[%c0_11, %c0_12] : memref<16x32xf32, #tpu.memory_space<vmem>>, vector<16x32xf32>
      tpu.vector_store %arg8[%c0_11, %c0_12], %13 {strides = array<i32>} : memref<16x32xf32, #tpu.memory_space<vmem>>, vector<16x32xf32>,
    } else {
    }
    %c0 = arith.constant 0 : index
    %c0_1 = arith.constant 0 : index
    %3 = vector.load %arg8[%c0, %c0_1] : memref<16x32xf32, #tpu.memory_space<vmem>>, vector<16x32xf32>
    %c0_2 = arith.constant 0 : index
    %c0_3 = arith.constant 0 : index
    %4 = vector.load %arg3[%c0_2, %c0_3] : memref<16x32xf32, #tpu.memory_space<vmem>>, vector<16x32xf32>
    %5 = arith.truncf %4 : vector<16x32xf32> to vector<16x32xbf16>
    %c0_4 = arith.constant 0 : index
    %c0_5 = arith.constant 0 : index
    %6 = vector.load %arg4[%c0_4, %c0_5] : memref<32x32xbf16, #tpu.memory_space<vmem>>, vector<32x32xbf16>
    %cst = arith.constant dense<0.000000e+00> : vector<16x32xf32>
    %7 = tpu.matmul %5, %6, %cst {dimension_numbers = #tpu.dot_dimension_numbers<[1], [0], [0], [1], [0, 0, 1, 1], [], []>} : vector<16x32xbf16>, vector<32x32xbf16>, vector<16x32xf32> -> vector<16x32xf32>
    %8 = arith.addf %3, %7 : vector<16x32xf32>
    %c0_6 = arith.constant 0 : index
    %c0_7 = arith.constant 0 : index
    %9 = vector.load %arg8[%c0_6, %c0_7] : memref<16x32xf32, #tpu.memory_space<vmem>>, vector<16x32xf32>
    tpu.vector_store %arg8[%c0_6, %c0_7], %8 {strides = array<i32>} : memref<16x32xf32, #tpu.memory_space<vmem>>, vector<16x32xf32>,
    %c0_i32_8 = arith.constant 0 : i32
    %10 = arith.cmpi eq, %arg2, %c0_i32_8 : i32
    %11 = arith.extui %10 : i1 to i32
    %c0_i32_9 = arith.constant 0 : i32
    %12 = arith.cmpi ne, %11, %c0_i32_9 : i32
    scf.if %12 {
      %c0_10 = arith.constant 0 : index
      %c0_11 = arith.constant 0 : index
      %13 = vector.load %arg8[%c0_10, %c0_11] : memref<16x32xf32, #tpu.memory_space<vmem>>, vector<16x32xf32>
      %c0_12 = arith.constant 0 : index
      %c0_13 = arith.constant 0 : index
      %14 = vector.load %arg5[%c0_12, %c0_13] : memref<1x32xf32, #tpu.memory_space<vmem>>, vector<1x32xf32>
      %15 = vector.broadcast %14 : vector<1x32xf32> to vector<16x32xf32>
      %16 = arith.addf %13, %15 : vector<16x32xf32>
      %c0_14 = arith.constant 0 : index
      %c0_15 = arith.constant 0 : index
      %17 = vector.load %arg6[%c0_14, %c0_15] : memref<16x32xf32, #tpu.memory_space<vmem>>, vector<16x32xf32>
      %18 = arith.addf %16, %17 : vector<16x32xf32>
      %c0_16 = arith.constant 0 : index
      %c0_17 = arith.constant 0 : index
      %19 = vector.load %arg7[%c0_16, %c0_17] : memref<16x32xf32, #tpu.memory_space<vmem>>, vector<16x32xf32>
      tpu.vector_store %arg7[%c0_16, %c0_17], %18 {strides = array<i32>} : memref<16x32xf32, #tpu.memory_space<vmem>>, vector<16x32xf32>,
    } else {
    }
    return
  }
  func.func @transform_0(%arg0: i32, %arg1: i32, %arg2: i32) -> (i32, i32) {
    %c0_i32 = arith.constant 0 : i32
    return %arg0, %arg2 : i32, i32
  }
  func.func @transform_1(%arg0: i32, %arg1: i32, %arg2: i32) -> (i32, i32) {
    %c0_i32 = arith.constant 0 : i32
    return %arg2, %arg1 : i32, i32
  }
  func.func @transform_2(%arg0: i32, %arg1: i32, %arg2: i32) -> (i32, i32) {
    %c0_i32 = arith.constant 0 : i32
    %c0_i32_0 = arith.constant 0 : i32
    return %c0_i32, %arg1 : i32, i32
  }
  func.func @transform_3(%arg0: i32, %arg1: i32, %arg2: i32) -> (i32, i32) {
    %c0_i32 = arith.constant 0 : i32
    return %arg0, %arg1 : i32, i32
  }
  func.func @transform_4(%arg0: i32, %arg1: i32, %arg2: i32) -> (i32, i32) {
    %c0_i32 = arith.constant 0 : i32
    return %arg0, %arg1 : i32, i32
  }
}

module attributes {stable_mosaic.version = 11 : i64} {
  func.func @_attn_bias_kernel(%arg0: i32, %arg1: memref<1x4x8x8xf32, #tpu.memory_space<vmem>>, %arg2: memref<1x4x8x8xf32, #tpu.memory_space<vmem>>, %arg3: memref<1x4x8x8xf32, #tpu.memory_space<vmem>>, %arg4: memref<1x1x8x8xf32, #tpu.memory_space<vmem>>, %arg5: memref<1x4x8x8xf32, #tpu.memory_space<vmem>>, %arg6: memref<1x4x8x8xf32, #tpu.memory_space<vmem>>) attributes {dimension_semantics = [#tpu.dimension_semantics<parallel>], iteration_bounds = array<i64: 2>, scalar_prefetch = 0 : i64, scratch_operands = 0 : i64, tpu.core_type = #tpu.core_type<tc>, window_params = [{transform_indices = @transform_0, window_bounds = array<i64: 1, 4, 8, 8>}, {transform_indices = @transform_1, window_bounds = array<i64: 1, 4, 8, 8>}, {transform_indices = @transform_2, window_bounds = array<i64: 1, 4, 8, 8>}, {pipeline_mode = #tpu.pipeline_mode<synchronous>, transform_indices = @transform_3, window_bounds = array<i64: 1, 1, 8, 8>}, {transform_indices = @transform_4, window_bounds = array<i64: 1, 4, 8, 8>}, {transform_indices = @transform_5, window_bounds = array<i64: 1, 4, 8, 8>}]} {
    %c0 = arith.constant 0 : index
    %c0_0 = arith.constant 0 : index
    %c0_1 = arith.constant 0 : index
    %c0_2 = arith.constant 0 : index
    %0 = vector.load %arg4[%c0, %c0_0, %c0_1, %c0_2] : memref<1x1x8x8xf32, #tpu.memory_space<vmem>>, vector<1x1x8x8xf32>
    %1 = vector.shape_cast %0 : vector<1x1x8x8xf32> to vector<1x8x8xf32>
    %c0_3 = arith.constant 0 : index
    %c0_4 = arith.constant 0 : index
    %c0_5 = arith.constant 0 : index
    %c0_6 = arith.constant 0 : index
    %2 = vector.load %arg1[%c0_3, %c0_4, %c0_5, %c0_6] : memref<1x4x8x8xf32, #tpu.memory_space<vmem>>, vector<1x4x8x8xf32>
    %3 = vector.shape_cast %2 : vector<1x4x8x8xf32> to vector<4x8x8xf32>
    %cst = arith.constant 0.353553385 : f32
    %4 = vector.broadcast %cst : f32 to vector<4x8x8xf32>
    %5 = arith.mulf %3, %4 : vector<4x8x8xf32>
    %6 = arith.truncf %5 : vector<4x8x8xf32> to vector<4x8x8xbf16>
    %c0_7 = arith.constant 0 : index
    %c0_8 = arith.constant 0 : index
    %c0_9 = arith.constant 0 : index
    %c0_10 = arith.constant 0 : index
    %7 = vector.load %arg2[%c0_7, %c0_8, %c0_9, %c0_10] : memref<1x4x8x8xf32, #tpu.memory_space<vmem>>, vector<1x4x8x8xf32>
    %8 = vector.shape_cast %7 : vector<1x4x8x8xf32> to vector<4x8x8xf32>
    %9 = arith.truncf %8 : vector<4x8x8xf32> to vector<4x8x8xbf16>
    %c0_11 = arith.constant 0 : index
    %c0_12 = arith.constant 0 : index
    %c0_13 = arith.constant 0 : index
    %c0_14 = arith.constant 0 : index
    %10 = vector.load %arg3[%c0_11, %c0_12, %c0_13, %c0_14] : memref<1x4x8x8xf32, #tpu.memory_space<vmem>>, vector<1x4x8x8xf32>
    %11 = vector.shape_cast %10 : vector<1x4x8x8xf32> to vector<4x8x8xf32>
    %12 = arith.truncf %11 : vector<4x8x8xf32> to vector<4x8x8xbf16>
    "tpu.trace_start"() <{level = 10 : i32, message = "hqd,hkd->hqk"}> : () -> ()
    %cst_15 = arith.constant dense<0.000000e+00> : vector<4x8x8xf32>
    %13 = tpu.matmul %6, %9, %cst_15 {dimension_numbers = #tpu.dot_dimension_numbers<[2], [2], [1], [1], [0, 0, 0, 1, 1, 1], [0], [0]>} : vector<4x8x8xbf16>, vector<4x8x8xbf16>, vector<4x8x8xf32> -> vector<4x8x8xf32>
    "tpu.trace_stop"() : () -> ()
    %14 = vector.broadcast %1 : vector<1x8x8xf32> to vector<4x8x8xf32>
    %15 = arith.addf %13, %14 : vector<4x8x8xf32>
    %cst_16 = arith.constant dense<0xFF800000> : vector<4x8xf32>
    %16 = vector.multi_reduction <maximumf>, %15, %cst_16 [2] : vector<4x8x8xf32> to vector<4x8xf32>
    %17 = vector.shape_cast %16 : vector<4x8xf32> to vector<4x8x1xf32>
    %18 = vector.broadcast %17 : vector<4x8x1xf32> to vector<4x8x8xf32>
    %19 = arith.subf %15, %18 : vector<4x8x8xf32>
    %20 = math.exp %19 : vector<4x8x8xf32>
    %cst_17 = arith.constant dense<0.000000e+00> : vector<4x8xf32>
    %21 = vector.multi_reduction <add>, %20, %cst_17 [2] : vector<4x8x8xf32> to vector<4x8xf32>
    %22 = vector.shape_cast %21 : vector<4x8xf32> to vector<4x8x1xf32>
    %23 = tpu.reciprocal %22 {approx = true} : vector<4x8x1xf32> -> vector<4x8x1xf32>
    %24 = vector.broadcast %23 : vector<4x8x1xf32> to vector<4x8x8xf32>
    %25 = arith.mulf %20, %24 : vector<4x8x8xf32>
    %c0_18 = arith.constant 0 : index
    %c0_19 = arith.constant 0 : index
    %c0_20 = arith.constant 0 : index
    %c0_21 = arith.constant 0 : index
    %26 = vector.load %arg6[%c0_18, %c0_19, %c0_20, %c0_21] : memref<1x4x8x8xf32, #tpu.memory_space<vmem>>, vector<1x4x8x8xf32>
    %27 = vector.shape_cast %26 : vector<1x4x8x8xf32> to vector<4x8x8xf32>
    %28 = vector.shape_cast %25 : vector<4x8x8xf32> to vector<1x4x8x8xf32>
    tpu.vector_store %arg6[%c0_18, %c0_19, %c0_20, %c0_21], %28 {strides = array<i32>} : memref<1x4x8x8xf32, #tpu.memory_space<vmem>>, vector<1x4x8x8xf32>,
    %29 = arith.truncf %25 : vector<4x8x8xf32> to vector<4x8x8xbf16>
    "tpu.trace_start"() <{level = 10 : i32, message = "hqk,hkd->hqd"}> : () -> ()
    %cst_22 = arith.constant dense<0.000000e+00> : vector<4x8x8xf32>
    %30 = tpu.matmul %29, %12, %cst_22 {dimension_numbers = #tpu.dot_dimension_numbers<[2], [1], [1], [2], [0, 0, 0, 1, 1, 2], [0], [0]>} : vector<4x8x8xbf16>, vector<4x8x8xbf16>, vector<4x8x8xf32> -> vector<4x8x8xf32>
    "tpu.trace_stop"() : () -> ()
    %c0_23 = arith.constant 0 : index
    %c0_24 = arith.constant 0 : index
    %c0_25 = arith.constant 0 : index
    %c0_26 = arith.constant 0 : index
    %31 = vector.load %arg5[%c0_23, %c0_24, %c0_25, %c0_26] : memref<1x4x8x8xf32, #tpu.memory_space<vmem>>, vector<1x4x8x8xf32>
    %32 = vector.shape_cast %31 : vector<1x4x8x8xf32> to vector<4x8x8xf32>
    %33 = vector.shape_cast %30 : vector<4x8x8xf32> to vector<1x4x8x8xf32>
    tpu.vector_store %arg5[%c0_23, %c0_24, %c0_25, %c0_26], %33 {strides = array<i32>} : memref<1x4x8x8xf32, #tpu.memory_space<vmem>>, vector<1x4x8x8xf32>,
    return
  }
  func.func @transform_0(%arg0: i32) -> (i32, i32, i32, i32) {
    %c0_i32 = arith.constant 0 : i32
    %c0_i32_0 = arith.constant 0 : i32
    %c0_i32_1 = arith.constant 0 : i32
    %c0_i32_2 = arith.constant 0 : i32
    return %arg0, %c0_i32, %c0_i32_0, %c0_i32_1 : i32, i32, i32, i32
  }
  func.func @transform_1(%arg0: i32) -> (i32, i32, i32, i32) {
    %c0_i32 = arith.constant 0 : i32
    %c0_i32_0 = arith.constant 0 : i32
    %c0_i32_1 = arith.constant 0 : i32
    %c0_i32_2 = arith.constant 0 : i32
    return %arg0, %c0_i32, %c0_i32_0, %c0_i32_1 : i32, i32, i32, i32
  }
  func.func @transform_2(%arg0: i32) -> (i32, i32, i32, i32) {
    %c0_i32 = arith.constant 0 : i32
    %c0_i32_0 = arith.constant 0 : i32
    %c0_i32_1 = arith.constant 0 : i32
    %c0_i32_2 = arith.constant 0 : i32
    return %arg0, %c0_i32, %c0_i32_0, %c0_i32_1 : i32, i32, i32, i32
  }
  func.func @transform_3(%arg0: i32) -> (i32, i32, i32, i32) {
    %c0_i32 = arith.constant 0 : i32
    %c0_i32_0 = arith.constant 0 : i32
    %c0_i32_1 = arith.constant 0 : i32
    %c0_i32_2 = arith.constant 0 : i32
    %c0_i32_3 = arith.constant 0 : i32
    return %c0_i32, %c0_i32_0, %c0_i32_1, %c0_i32_2 : i32, i32, i32, i32
  }
  func.func @transform_4(%arg0: i32) -> (i32, i32, i32, i32) {
    %c0_i32 = arith.constant 0 : i32
    %c0_i32_0 = arith.constant 0 : i32
    %c0_i32_1 = arith.constant 0 : i32
    %c0_i32_2 = arith.constant 0 : i32
    return %arg0, %c0_i32, %c0_i32_0, %c0_i32_1 : i32, i32, i32, i32
  }
  func.func @transform_5(%arg0: i32) -> (i32, i32, i32, i32) {
    %c0_i32 = arith.constant 0 : i32
    %c0_i32_0 = arith.constant 0 : i32
    %c0_i32_1 = arith.constant 0 : i32
    %c0_i32_2 = arith.constant 0 : i32
    return %arg0, %c0_i32, %c0_i32_0, %c0_i32_1 : i32, i32, i32, i32
  }
}

module attributes {stable_mosaic.version = 11 : i64} {
  func.func @_ln_matmul_kernel(%arg0: i32, %arg1: i32, %arg2: memref<16x32xf32, #tpu.memory_space<vmem>>, %arg3: memref<1x32xf32, #tpu.memory_space<vmem>>, %arg4: memref<1x32xf32, #tpu.memory_space<vmem>>, %arg5: memref<32x32xbf16, #tpu.memory_space<vmem>>, %arg6: memref<1x32xf32, #tpu.memory_space<vmem>>, %arg7: memref<16x32xf32, #tpu.memory_space<vmem>>) attributes {dimension_semantics = [#tpu.dimension_semantics<parallel>, #tpu.dimension_semantics<parallel>], iteration_bounds = array<i64: 1, 1>, scalar_prefetch = 0 : i64, scratch_operands = 0 : i64, tpu.core_type = #tpu.core_type<tc>, window_params = [{transform_indices = @transform_0, window_bounds = array<i64: 16, 32>}, {pipeline_mode = #tpu.pipeline_mode<synchronous>, transform_indices = @transform_1, window_bounds = array<i64: 1, 32>}, {pipeline_mode = #tpu.pipeline_mode<synchronous>, transform_indices = @transform_2, window_bounds = array<i64: 1, 32>}, {transform_indices = @transform_3, window_bounds = array<i64: 32, 32>}, {transform_indices = @transform_4, window_bounds = array<i64: 1, 32>}, {transform_indices = @transform_5, window_bounds = array<i64: 16, 32>}]} {
    %c0 = arith.constant 0 : index
    %c0_0 = arith.constant 0 : index
    %0 = vector.load %arg2[%c0, %c0_0] : memref<16x32xf32, #tpu.memory_space<vmem>>, vector<16x32xf32>
    %cst = arith.constant dense<0.000000e+00> : vector<16xf32>
    %1 = vector.multi_reduction <add>, %0, %cst [1] : vector<16x32xf32> to vector<16xf32>
    %2 = vector.shape_cast %1 : vector<16xf32> to vector<16x1xf32>
    %cst_1 = arith.constant 3.200000e+01 : f32
    %3 = vector.broadcast %cst_1 : f32 to vector<16x1xf32>
    %4 = arith.divf %2, %3 : vector<16x1xf32>
    %5 = vector.broadcast %4 : vector<16x1xf32> to vector<16x32xf32>
    %6 = arith.subf %0, %5 : vector<16x32xf32>
    %7 = arith.mulf %6, %6 : vector<16x32xf32>
    %cst_2 = arith.constant dense<0.000000e+00> : vector<16xf32>
    %8 = vector.multi_reduction <add>, %7, %cst_2 [1] : vector<16x32xf32> to vector<16xf32>
    %9 = vector.shape_cast %8 : vector<16xf32> to vector<16x1xf32>
    %cst_3 = arith.constant 3.200000e+01 : f32
    %10 = vector.broadcast %cst_3 : f32 to vector<16x1xf32>
    %11 = arith.divf %9, %10 : vector<16x1xf32>
    %12 = vector.broadcast %4 : vector<16x1xf32> to vector<16x32xf32>
    %13 = arith.subf %0, %12 : vector<16x32xf32>
    %cst_4 = arith.constant 9.99999974E-6 : f32
    %14 = vector.broadcast %cst_4 : f32 to vector<16x1xf32>
    %15 = arith.addf %11, %14 : vector<16x1xf32>
    %16 = math.rsqrt %15 : vector<16x1xf32>
    %17 = vector.broadcast %16 : vector<16x1xf32> to vector<16x32xf32>
    %18 = arith.mulf %13, %17 : vector<16x32xf32>
    %c0_5 = arith.constant 0 : index
    %c0_6 = arith.constant 0 : index
    %19 = vector.load %arg3[%c0_5, %c0_6] : memref<1x32xf32, #tpu.memory_space<vmem>>, vector<1x32xf32>
    %20 = vector.broadcast %19 : vector<1x32xf32> to vector<16x32xf32>
    %21 = arith.mulf %18, %20 : vector<16x32xf32>
    %c0_7 = arith.constant 0 : index
    %c0_8 = arith.constant 0 : index
    %22 = vector.load %arg4[%c0_7, %c0_8] : memref<1x32xf32, #tpu.memory_space<vmem>>, vector<1x32xf32>
    %23 = vector.broadcast %22 : vector<1x32xf32> to vector<16x32xf32>
    %24 = arith.addf %21, %23 : vector<16x32xf32>
    %25 = arith.truncf %24 : vector<16x32xf32> to vector<16x32xbf16>
    %c0_9 = arith.constant 0 : index
    %c0_10 = arith.constant 0 : index
    %26 = vector.load %arg5[%c0_9, %c0_10] : memref<32x32xbf16, #tpu.memory_space<vmem>>, vector<32x32xbf16>
    %cst_11 = arith.constant dense<0.000000e+00> : vector<16x32xf32>
    %27 = tpu.matmul %25, %26, %cst_11 {dimension_numbers = #tpu.dot_dimension_numbers<[1], [0], [0], [1], [0, 0, 1, 1], [], []>} : vector<16x32xbf16>, vector<32x32xbf16>, vector<16x32xf32> -> vector<16x32xf32>
    %c0_12 = arith.constant 0 : index
    %c0_13 = arith.constant 0 : index
    %28 = vector.load %arg6[%c0_12, %c0_13] : memref<1x32xf32, #tpu.memory_space<vmem>>, vector<1x32xf32>
    %29 = vector.broadcast %28 : vector<1x32xf32> to vector<16x32xf32>
    %30 = arith.addf %27, %29 : vector<16x32xf32>
    %c0_14 = arith.constant 0 : index
    %c0_15 = arith.constant 0 : index
    %31 = vector.load %arg7[%c0_14, %c0_15] : memref<16x32xf32, #tpu.memory_space<vmem>>, vector<16x32xf32>
    tpu.vector_store %arg7[%c0_14, %c0_15], %30 {strides = array<i32>} : memref<16x32xf32, #tpu.memory_space<vmem>>, vector<16x32xf32>,
    return
  }
  func.func @transform_0(%arg0: i32, %arg1: i32) -> (i32, i32) {
    %c0_i32 = arith.constant 0 : i32
    %c0_i32_0 = arith.constant 0 : i32
    return %arg0, %c0_i32 : i32, i32
  }
  func.func @transform_1(%arg0: i32, %arg1: i32) -> (i32, i32) {
    %c0_i32 = arith.constant 0 : i32
    %c0_i32_0 = arith.constant 0 : i32
    %c0_i32_1 = arith.constant 0 : i32
    return %c0_i32, %c0_i32_0 : i32, i32
  }
  func.func @transform_2(%arg0: i32, %arg1: i32) -> (i32, i32) {
    %c0_i32 = arith.constant 0 : i32
    %c0_i32_0 = arith.constant 0 : i32
    %c0_i32_1 = arith.constant 0 : i32
    return %c0_i32, %c0_i32_0 : i32, i32
  }
  func.func @transform_3(%arg0: i32, %arg1: i32) -> (i32, i32) {
    %c0_i32 = arith.constant 0 : i32
    %c0_i32_0 = arith.constant 0 : i32
    return %c0_i32, %arg1 : i32, i32
  }
  func.func @transform_4(%arg0: i32, %arg1: i32) -> (i32, i32) {
    %c0_i32 = arith.constant 0 : i32
    %c0_i32_0 = arith.constant 0 : i32
    return %c0_i32, %arg1 : i32, i32
  }
  func.func @transform_5(%arg0: i32, %arg1: i32) -> (i32, i32) {
    %c0_i32 = arith.constant 0 : i32
    return %arg0, %arg1 : i32, i32
  }
}

module attributes {stable_mosaic.version = 11 : i64} {
  func.func @_matmul_kernel(%arg0: i32, %arg1: i32, %arg2: i32, %arg3: memref<16x32xf32, #tpu.memory_space<vmem>>, %arg4: memref<32x64xbf16, #tpu.memory_space<vmem>>, %arg5: memref<1x64xf32, #tpu.memory_space<vmem>>, %arg6: memref<16x64xf32, #tpu.memory_space<vmem>>, %arg7: memref<16x64xf32, #tpu.memory_space<vmem>>) attributes {dimension_semantics = [#tpu.dimension_semantics<parallel>, #tpu.dimension_semantics<parallel>, #tpu.dimension_semantics<arbitrary>], iteration_bounds = array<i64: 1, 1, 1>, scalar_prefetch = 0 : i64, scratch_operands = 1 : i64, tpu.core_type = #tpu.core_type<tc>, window_params = [{transform_indices = @transform_0, window_bounds = array<i64: 16, 32>}, {transform_indices = @transform_1, window_bounds = array<i64: 32, 64>}, {transform_indices = @transform_2, window_bounds = array<i64: 1, 64>}, {transform_indices = @transform_3, window_bounds = array<i64: 16, 64>}]} {
    %c0_i32 = arith.constant 0 : i32
    %0 = arith.cmpi eq, %arg2, %c0_i32 : i32
    %1 = arith.extui %0 : i1 to i32
    %c0_i32_0 = arith.constant 0 : i32
    %2 = arith.cmpi ne, %1, %c0_i32_0 : i32
    scf.if %2 {
      %cst_10 = arith.constant 0.000000e+00 : f32
      %13 = vector.broadcast %cst_10 : f32 to vector<16x64xf32>
      %c0_11 = arith.constant 0 : index
      %c0_12 = arith.constant 0 : index
      %14 = vector.load %arg7[%c0_11, %c0_12] : memref<16x64xf32, #tpu.memory_space<vmem>>, vector<16x64xf32>
      tpu.vector_store %arg7[%c0_11, %c0_12], %13 {strides = array<i32>} : memref<16x64xf32, #tpu.memory_space<vmem>>, vector<16x64xf32>,
    } else {
    }
    %c0 = arith.constant 0 : index
    %c0_1 = arith.constant 0 : index
    %3 = vector.load %arg7[%c0, %c0_1] : memref<16x64xf32, #tpu.memory_space<vmem>>, vector<16x64xf32>
    %c0_2 = arith.constant 0 : index
    %c0_3 = arith.constant 0 : index
    %4 = vector.load %arg3[%c0_2, %c0_3] : memref<16x32xf32, #tpu.memory_space<vmem>>, vector<16x32xf32>
    %5 = arith.truncf %4 : vector<16x32xf32> to vector<16x32xbf16>
    %c0_4 = arith.constant 0 : index
    %c0_5 = arith.constant 0 : index
    %6 = vector.load %arg4[%c0_4, %c0_5] : memref<32x64xbf16, #tpu.memory_space<vmem>>, vector<32x64xbf16>
    %cst = arith.constant dense<0.000000e+00> : vector<16x64xf32>
    %7 = tpu.matmul %5, %6, %cst {dimension_numbers = #tpu.dot_dimension_numbers<[1], [0], [0], [1], [0, 0, 1, 1], [], []>} : vector<16x32xbf16>, vector<32x64xbf16>, vector<16x64xf32> -> vector<16x64xf32>
    %8 = arith.addf %3, %7 : vector<16x64xf32>
    %c0_6 = arith.constant 0 : index
    %c0_7 = arith.constant 0 : index
    %9 = vector.load %arg7[%c0_6, %c0_7] : memref<16x64xf32, #tpu.memory_space<vmem>>, vector<16x64xf32>
    tpu.vector_store %arg7[%c0_6, %c0_7], %8 {strides = array<i32>} : memref<16x64xf32, #tpu.memory_space<vmem>>, vector<16x64xf32>,
    %c0_i32_8 = arith.constant 0 : i32
    %10 = arith.cmpi eq, %arg2, %c0_i32_8 : i32
    %11 = arith.extui %10 : i1 to i32
    %c0_i32_9 = arith.constant 0 : i32
    %12 = arith.cmpi ne, %11, %c0_i32_9 : i32
    scf.if %12 {
      %c0_10 = arith.constant 0 : index
      %c0_11 = arith.constant 0 : index
      %13 = vector.load %arg7[%c0_10, %c0_11] : memref<16x64xf32, #tpu.memory_space<vmem>>, vector<16x64xf32>
      %c0_12 = arith.constant 0 : index
      %c0_13 = arith.constant 0 : index
      %14 = vector.load %arg5[%c0_12, %c0_13] : memref<1x64xf32, #tpu.memory_space<vmem>>, vector<1x64xf32>
      %15 = vector.broadcast %14 : vector<1x64xf32> to vector<16x64xf32>
      %16 = arith.addf %13, %15 : vector<16x64xf32>
      %c0_14 = arith.constant 0 : index
      %c0_15 = arith.constant 0 : index
      %17 = vector.load %arg6[%c0_14, %c0_15] : memref<16x64xf32, #tpu.memory_space<vmem>>, vector<16x64xf32>
      tpu.vector_store %arg6[%c0_14, %c0_15], %16 {strides = array<i32>} : memref<16x64xf32, #tpu.memory_space<vmem>>, vector<16x64xf32>,
    } else {
    }
    return
  }
  func.func @transform_0(%arg0: i32, %arg1: i32, %arg2: i32) -> (i32, i32) {
    %c0_i32 = arith.constant 0 : i32
    return %arg0, %arg2 : i32, i32
  }
  func.func @transform_1(%arg0: i32, %arg1: i32, %arg2: i32) -> (i32, i32) {
    %c0_i32 = arith.constant 0 : i32
    return %arg2, %arg1 : i32, i32
  }
  func.func @transform_2(%arg0: i32, %arg1: i32, %arg2: i32) -> (i32, i32) {
    %c0_i32 = arith.constant 0 : i32
    %c0_i32_0 = arith.constant 0 : i32
    return %c0_i32, %arg1 : i32, i32
  }
  func.func @transform_3(%arg0: i32, %arg1: i32, %arg2: i32) -> (i32, i32) {
    %c0_i32 = arith.constant 0 : i32
    return %arg0, %arg1 : i32, i32
  }
}

module attributes {stable_mosaic.version = 11 : i64} {
  func.func @_attn_kernel(%arg0: i32, %arg1: memref<1x4x8x8xf32, #tpu.memory_space<vmem>>, %arg2: memref<1x4x8x8xf32, #tpu.memory_space<vmem>>, %arg3: memref<1x4x8x8xf32, #tpu.memory_space<vmem>>, %arg4: memref<1x4x8x8xf32, #tpu.memory_space<vmem>>, %arg5: memref<1x4x8x8xf32, #tpu.memory_space<vmem>>) attributes {dimension_semantics = [#tpu.dimension_semantics<parallel>], iteration_bounds = array<i64: 2>, scalar_prefetch = 0 : i64, scratch_operands = 0 : i64, tpu.core_type = #tpu.core_type<tc>, window_params = [{transform_indices = @transform_0, window_bounds = array<i64: 1, 4, 8, 8>}, {transform_indices = @transform_1, window_bounds = array<i64: 1, 4, 8, 8>}, {transform_indices = @transform_2, window_bounds = array<i64: 1, 4, 8, 8>}, {transform_indices = @transform_3, window_bounds = array<i64: 1, 4, 8, 8>}, {transform_indices = @transform_4, window_bounds = array<i64: 1, 4, 8, 8>}]} {
    %c0 = arith.constant 0 : index
    %c0_0 = arith.constant 0 : index
    %c0_1 = arith.constant 0 : index
    %c0_2 = arith.constant 0 : index
    %0 = vector.load %arg1[%c0, %c0_0, %c0_1, %c0_2] : memref<1x4x8x8xf32, #tpu.memory_space<vmem>>, vector<1x4x8x8xf32>
    %1 = vector.shape_cast %0 : vector<1x4x8x8xf32> to vector<4x8x8xf32>
    %cst = arith.constant 0.353553385 : f32
    %2 = vector.broadcast %cst : f32 to vector<4x8x8xf32>
    %3 = arith.mulf %1, %2 : vector<4x8x8xf32>
    %4 = arith.truncf %3 : vector<4x8x8xf32> to vector<4x8x8xbf16>
    %c0_3 = arith.constant 0 : index
    %c0_4 = arith.constant 0 : index
    %c0_5 = arith.constant 0 : index
    %c0_6 = arith.constant 0 : index
    %5 = vector.load %arg2[%c0_3, %c0_4, %c0_5, %c0_6] : memref<1x4x8x8xf32, #tpu.memory_space<vmem>>, vector<1x4x8x8xf32>
    %6 = vector.shape_cast %5 : vector<1x4x8x8xf32> to vector<4x8x8xf32>
    %7 = arith.truncf %6 : vector<4x8x8xf32> to vector<4x8x8xbf16>
    %c0_7 = arith.constant 0 : index
    %c0_8 = arith.constant 0 : index
    %c0_9 = arith.constant 0 : index
    %c0_10 = arith.constant 0 : index
    %8 = vector.load %arg3[%c0_7, %c0_8, %c0_9, %c0_10] : memref<1x4x8x8xf32, #tpu.memory_space<vmem>>, vector<1x4x8x8xf32>
    %9 = vector.shape_cast %8 : vector<1x4x8x8xf32> to vector<4x8x8xf32>
    %10 = arith.truncf %9 : vector<4x8x8xf32> to vector<4x8x8xbf16>
    "tpu.trace_start"() <{level = 10 : i32, message = "hqd,hkd->hqk"}> : () -> ()
    %cst_11 = arith.constant dense<0.000000e+00> : vector<4x8x8xf32>
    %11 = tpu.matmul %4, %7, %cst_11 {dimension_numbers = #tpu.dot_dimension_numbers<[2], [2], [1], [1], [0, 0, 0, 1, 1, 1], [0], [0]>} : vector<4x8x8xbf16>, vector<4x8x8xbf16>, vector<4x8x8xf32> -> vector<4x8x8xf32>
    "tpu.trace_stop"() : () -> ()
    %cst_12 = arith.constant dense<0xFF800000> : vector<4x8xf32>
    %12 = vector.multi_reduction <maximumf>, %11, %cst_12 [2] : vector<4x8x8xf32> to vector<4x8xf32>
    %13 = vector.shape_cast %12 : vector<4x8xf32> to vector<4x8x1xf32>
    %14 = vector.broadcast %13 : vector<4x8x1xf32> to vector<4x8x8xf32>
    %15 = arith.subf %11, %14 : vector<4x8x8xf32>
    %16 = math.exp %15 : vector<4x8x8xf32>
    %cst_13 = arith.constant dense<0.000000e+00> : vector<4x8xf32>
    %17 = vector.multi_reduction <add>, %16, %cst_13 [2] : vector<4x8x8xf32> to vector<4x8xf32>
    %18 = vector.shape_cast %17 : vector<4x8xf32> to vector<4x8x1xf32>
    %19 = tpu.reciprocal %18 {approx = true} : vector<4x8x1xf32> -> vector<4x8x1xf32>
    %20 = vector.broadcast %19 : vector<4x8x1xf32> to vector<4x8x8xf32>
    %21 = arith.mulf %16, %20 : vector<4x8x8xf32>
    %c0_14 = arith.constant 0 : index
    %c0_15 = arith.constant 0 : index
    %c0_16 = arith.constant 0 : index
    %c0_17 = arith.constant 0 : index
    %22 = vector.load %arg5[%c0_14, %c0_15, %c0_16, %c0_17] : memref<1x4x8x8xf32, #tpu.memory_space<vmem>>, vector<1x4x8x8xf32>
    %23 = vector.shape_cast %22 : vector<1x4x8x8xf32> to vector<4x8x8xf32>
    %24 = vector.shape_cast %21 : vector<4x8x8xf32> to vector<1x4x8x8xf32>
    tpu.vector_store %arg5[%c0_14, %c0_15, %c0_16, %c0_17], %24 {strides = array<i32>} : memref<1x4x8x8xf32, #tpu.memory_space<vmem>>, vector<1x4x8x8xf32>,
    %25 = arith.truncf %21 : vector<4x8x8xf32> to vector<4x8x8xbf16>
    "tpu.trace_start"() <{level = 10 : i32, message = "hqk,hkd->hqd"}> : () -> ()
    %cst_18 = arith.constant dense<0.000000e+00> : vector<4x8x8xf32>
    %26 = tpu.matmul %25, %10, %cst_18 {dimension_numbers = #tpu.dot_dimension_numbers<[2], [1], [1], [2], [0, 0, 0, 1, 1, 2], [0], [0]>} : vector<4x8x8xbf16>, vector<4x8x8xbf16>, vector<4x8x8xf32> -> vector<4x8x8xf32>
    "tpu.trace_stop"() : () -> ()
    %c0_19 = arith.constant 0 : index
    %c0_20 = arith.constant 0 : index
    %c0_21 = arith.constant 0 : index
    %c0_22 = arith.constant 0 : index
    %27 = vector.load %arg4[%c0_19, %c0_20, %c0_21, %c0_22] : memref<1x4x8x8xf32, #tpu.memory_space<vmem>>, vector<1x4x8x8xf32>
    %28 = vector.shape_cast %27 : vector<1x4x8x8xf32> to vector<4x8x8xf32>
    %29 = vector.shape_cast %26 : vector<4x8x8xf32> to vector<1x4x8x8xf32>
    tpu.vector_store %arg4[%c0_19, %c0_20, %c0_21, %c0_22], %29 {strides = array<i32>} : memref<1x4x8x8xf32, #tpu.memory_space<vmem>>, vector<1x4x8x8xf32>,
    return
  }
  func.func @transform_0(%arg0: i32) -> (i32, i32, i32, i32) {
    %c0_i32 = arith.constant 0 : i32
    %c0_i32_0 = arith.constant 0 : i32
    %c0_i32_1 = arith.constant 0 : i32
    %c0_i32_2 = arith.constant 0 : i32
    return %arg0, %c0_i32, %c0_i32_0, %c0_i32_1 : i32, i32, i32, i32
  }
  func.func @transform_1(%arg0: i32) -> (i32, i32, i32, i32) {
    %c0_i32 = arith.constant 0 : i32
    %c0_i32_0 = arith.constant 0 : i32
    %c0_i32_1 = arith.constant 0 : i32
    %c0_i32_2 = arith.constant 0 : i32
    return %arg0, %c0_i32, %c0_i32_0, %c0_i32_1 : i32, i32, i32, i32
  }
  func.func @transform_2(%arg0: i32) -> (i32, i32, i32, i32) {
    %c0_i32 = arith.constant 0 : i32
    %c0_i32_0 = arith.constant 0 : i32
    %c0_i32_1 = arith.constant 0 : i32
    %c0_i32_2 = arith.constant 0 : i32
    return %arg0, %c0_i32, %c0_i32_0, %c0_i32_1 : i32, i32, i32, i32
  }
  func.func @transform_3(%arg0: i32) -> (i32, i32, i32, i32) {
    %c0_i32 = arith.constant 0 : i32
    %c0_i32_0 = arith.constant 0 : i32
    %c0_i32_1 = arith.constant 0 : i32
    %c0_i32_2 = arith.constant 0 : i32
    return %arg0, %c0_i32, %c0_i32_0, %c0_i32_1 : i32, i32, i32, i32
  }
  func.func @transform_4(%arg0: i32) -> (i32, i32, i32, i32) {
    %c0_i32 = arith.constant 0 : i32
    %c0_i32_0 = arith.constant 0 : i32
    %c0_i32_1 = arith.constant 0 : i32
    %c0_i32_2 = arith.constant 0 : i32
    return %arg0, %c0_i32, %c0_i32_0, %c0_i32_1 : i32, i32, i32, i32
  }
}

module attributes {stable_mosaic.version = 11 : i64} {
  func.func @_ln_ffn_kernel(%arg0: i32, %arg1: i32, %arg2: memref<16x32xf32, #tpu.memory_space<vmem>>, %arg3: memref<1x32xf32, #tpu.memory_space<vmem>>, %arg4: memref<1x32xf32, #tpu.memory_space<vmem>>, %arg5: memref<32x64xbf16, #tpu.memory_space<vmem>>, %arg6: memref<1x64xf32, #tpu.memory_space<vmem>>, %arg7: memref<64x32xbf16, #tpu.memory_space<vmem>>, %arg8: memref<1x32xf32, #tpu.memory_space<vmem>>, %arg9: memref<16x32xf32, #tpu.memory_space<vmem>>, %arg10: memref<16x32xf32, #tpu.memory_space<vmem>>) attributes {dimension_semantics = [#tpu.dimension_semantics<parallel>, #tpu.dimension_semantics<arbitrary>], iteration_bounds = array<i64: 1, 1>, scalar_prefetch = 0 : i64, scratch_operands = 1 : i64, tpu.core_type = #tpu.core_type<tc>, window_params = [{transform_indices = @transform_0, window_bounds = array<i64: 16, 32>}, {pipeline_mode = #tpu.pipeline_mode<synchronous>, transform_indices = @transform_1, window_bounds = array<i64: 1, 32>}, {pipeline_mode = #tpu.pipeline_mode<synchronous>, transform_indices = @transform_2, window_bounds = array<i64: 1, 32>}, {transform_indices = @transform_3, window_bounds = array<i64: 32, 64>}, {transform_indices = @transform_4, window_bounds = array<i64: 1, 64>}, {transform_indices = @transform_5, window_bounds = array<i64: 64, 32>}, {pipeline_mode = #tpu.pipeline_mode<synchronous>, transform_indices = @transform_6, window_bounds = array<i64: 1, 32>}, {transform_indices = @transform_7, window_bounds = array<i64: 16, 32>}]} {
    %c0_i32 = arith.constant 0 : i32
    %0 = arith.cmpi eq, %arg1, %c0_i32 : i32
    %1 = arith.extui %0 : i1 to i32
    %c0_i32_0 = arith.constant 0 : i32
    %2 = arith.cmpi ne, %1, %c0_i32_0 : i32
    scf.if %2 {
      %cst_25 = arith.constant 0.000000e+00 : f32
      %45 = vector.broadcast %cst_25 : f32 to vector<16x32xf32>
      %c0_26 = arith.constant 0 : index
      %c0_27 = arith.constant 0 : index
      %46 = vector.load %arg10[%c0_26, %c0_27] : memref<16x32xf32, #tpu.memory_space<vmem>>, vector<16x32xf32>
      tpu.vector_store %arg10[%c0_26, %c0_27], %45 {strides = array<i32>} : memref<16x32xf32, #tpu.memory_space<vmem>>, vector<16x32xf32>,
    } else {
    }
    %c0 = arith.constant 0 : index
    %c0_1 = arith.constant 0 : index
    %3 = vector.load %arg2[%c0, %c0_1] : memref<16x32xf32, #tpu.memory_space<vmem>>, vector<16x32xf32>
    %cst = arith.constant dense<0.000000e+00> : vector<16xf32>
    %4 = vector.multi_reduction <add>, %3, %cst [1] : vector<16x32xf32> to vector<16xf32>
    %5 = vector.shape_cast %4 : vector<16xf32> to vector<16x1xf32>
    %cst_2 = arith.constant 3.200000e+01 : f32
    %6 = vector.broadcast %cst_2 : f32 to vector<16x1xf32>
    %7 = arith.divf %5, %6 : vector<16x1xf32>
    %8 = vector.broadcast %7 : vector<16x1xf32> to vector<16x32xf32>
    %9 = arith.subf %3, %8 : vector<16x32xf32>
    %10 = arith.mulf %9, %9 : vector<16x32xf32>
    %cst_3 = arith.constant dense<0.000000e+00> : vector<16xf32>
    %11 = vector.multi_reduction <add>, %10, %cst_3 [1] : vector<16x32xf32> to vector<16xf32>
    %12 = vector.shape_cast %11 : vector<16xf32> to vector<16x1xf32>
    %cst_4 = arith.constant 3.200000e+01 : f32
    %13 = vector.broadcast %cst_4 : f32 to vector<16x1xf32>
    %14 = arith.divf %12, %13 : vector<16x1xf32>
    %15 = vector.broadcast %7 : vector<16x1xf32> to vector<16x32xf32>
    %16 = arith.subf %3, %15 : vector<16x32xf32>
    %cst_5 = arith.constant 9.99999974E-6 : f32
    %17 = vector.broadcast %cst_5 : f32 to vector<16x1xf32>
    %18 = arith.addf %14, %17 : vector<16x1xf32>
    %19 = math.rsqrt %18 : vector<16x1xf32>
    %20 = vector.broadcast %19 : vector<16x1xf32> to vector<16x32xf32>
    %21 = arith.mulf %16, %20 : vector<16x32xf32>
    %c0_6 = arith.constant 0 : index
    %c0_7 = arith.constant 0 : index
    %22 = vector.load %arg3[%c0_6, %c0_7] : memref<1x32xf32, #tpu.memory_space<vmem>>, vector<1x32xf32>
    %23 = vector.broadcast %22 : vector<1x32xf32> to vector<16x32xf32>
    %24 = arith.mulf %21, %23 : vector<16x32xf32>
    %c0_8 = arith.constant 0 : index
    %c0_9 = arith.constant 0 : index
    %25 = vector.load %arg4[%c0_8, %c0_9] : memref<1x32xf32, #tpu.memory_space<vmem>>, vector<1x32xf32>
    %26 = vector.broadcast %25 : vector<1x32xf32> to vector<16x32xf32>
    %27 = arith.addf %24, %26 : vector<16x32xf32>
    %28 = arith.truncf %27 : vector<16x32xf32> to vector<16x32xbf16>
    %c0_10 = arith.constant 0 : index
    %c0_11 = arith.constant 0 : index
    %29 = vector.load %arg5[%c0_10, %c0_11] : memref<32x64xbf16, #tpu.memory_space<vmem>>, vector<32x64xbf16>
    %cst_12 = arith.constant dense<0.000000e+00> : vector<16x64xf32>
    %30 = tpu.matmul %28, %29, %cst_12 {dimension_numbers = #tpu.dot_dimension_numbers<[1], [0], [0], [1], [0, 0, 1, 1], [], []>} : vector<16x32xbf16>, vector<32x64xbf16>, vector<16x64xf32> -> vector<16x64xf32>
    %c0_13 = arith.constant 0 : index
    %c0_14 = arith.constant 0 : index
    %31 = vector.load %arg6[%c0_13, %c0_14] : memref<1x64xf32, #tpu.memory_space<vmem>>, vector<1x64xf32>
    %32 = vector.broadcast %31 : vector<1x64xf32> to vector<16x64xf32>
    %33 = arith.addf %30, %32 : vector<16x64xf32>
    %cst_15 = arith.constant 0.000000e+00 : f32
    %34 = vector.broadcast %cst_15 : f32 to vector<16x64xf32>
    %35 = arith.maximumf %33, %34 : vector<16x64xf32>
    %c0_16 = arith.constant 0 : index
    %c0_17 = arith.constant 0 : index
    %36 = vector.load %arg10[%c0_16, %c0_17] : memref<16x32xf32, #tpu.memory_space<vmem>>, vector<16x32xf32>
    %37 = arith.truncf %35 : vector<16x64xf32> to vector<16x64xbf16>
    %c0_18 = arith.constant 0 : index
    %c0_19 = arith.constant 0 : index
    %38 = vector.load %arg7[%c0_18, %c0_19] : memref<64x32xbf16, #tpu.memory_space<vmem>>, vector<64x32xbf16>
    %cst_20 = arith.constant dense<0.000000e+00> : vector<16x32xf32>
    %39 = tpu.matmul %37, %38, %cst_20 {dimension_numbers = #tpu.dot_dimension_numbers<[1], [0], [0], [1], [0, 0, 1, 1], [], []>} : vector<16x64xbf16>, vector<64x32xbf16>, vector<16x32xf32> -> vector<16x32xf32>
    %40 = arith.addf %36, %39 : vector<16x32xf32>
    %c0_21 = arith.constant 0 : index
    %c0_22 = arith.constant 0 : index
    %41 = vector.load %arg10[%c0_21, %c0_22] : memref<16x32xf32, #tpu.memory_space<vmem>>, vector<16x32xf32>
    tpu.vector_store %arg10[%c0_21, %c0_22], %40 {strides = array<i32>} : memref<16x32xf32, #tpu.memory_space<vmem>>, vector<16x32xf32>,
    %c0_i32_23 = arith.constant 0 : i32
    %42 = arith.cmpi eq, %arg1, %c0_i32_23 : i32
    %43 = arith.extui %42 : i1 to i32
    %c0_i32_24 = arith.constant 0 : i32
    %44 = arith.cmpi ne, %43, %c0_i32_24 : i32
    scf.if %44 {
      %c0_25 = arith.constant 0 : index
      %c0_26 = arith.constant 0 : index
      %45 = vector.load %arg10[%c0_25, %c0_26] : memref<16x32xf32, #tpu.memory_space<vmem>>, vector<16x32xf32>
      %c0_27 = arith.constant 0 : index
      %c0_28 = arith.constant 0 : index
      %46 = vector.load %arg8[%c0_27, %c0_28] : memref<1x32xf32, #tpu.memory_space<vmem>>, vector<1x32xf32>
      %47 = vector.broadcast %46 : vector<1x32xf32> to vector<16x32xf32>
      %48 = arith.addf %45, %47 : vector<16x32xf32>
      %49 = arith.addf %48, %3 : vector<16x32xf32>
      %c0_29 = arith.constant 0 : index
      %c0_30 = arith.constant 0 : index
      %50 = vector.load %arg9[%c0_29, %c0_30] : memref<16x32xf32, #tpu.memory_space<vmem>>, vector<16x32xf32>
      tpu.vector_store %arg9[%c0_29, %c0_30], %49 {strides = array<i32>} : memref<16x32xf32, #tpu.memory_space<vmem>>, vector<16x32xf32>,
    } else {
    }
    return
  }
  func.func @transform_0(%arg0: i32, %arg1: i32) -> (i32, i32) {
    %c0_i32 = arith.constant 0 : i32
    %c0_i32_0 = arith.constant 0 : i32
    return %arg0, %c0_i32 : i32, i32
  }
  func.func @transform_1(%arg0: i32, %arg1: i32) -> (i32, i32) {
    %c0_i32 = arith.constant 0 : i32
    %c0_i32_0 = arith.constant 0 : i32
    %c0_i32_1 = arith.constant 0 : i32
    return %c0_i32, %c0_i32_0 : i32, i32
  }
  func.func @transform_2(%arg0: i32, %arg1: i32) -> (i32, i32) {
    %c0_i32 = arith.constant 0 : i32
    %c0_i32_0 = arith.constant 0 : i32
    %c0_i32_1 = arith.constant 0 : i32
    return %c0_i32, %c0_i32_0 : i32, i32
  }
  func.func @transform_3(%arg0: i32, %arg1: i32) -> (i32, i32) {
    %c0_i32 = arith.constant 0 : i32
    %c0_i32_0 = arith.constant 0 : i32
    return %c0_i32, %arg1 : i32, i32
  }
  func.func @transform_4(%arg0: i32, %arg1: i32) -> (i32, i32) {
    %c0_i32 = arith.constant 0 : i32
    %c0_i32_0 = arith.constant 0 : i32
    return %c0_i32, %arg1 : i32, i32
  }
  func.func @transform_5(%arg0: i32, %arg1: i32) -> (i32, i32) {
    %c0_i32 = arith.constant 0 : i32
    %c0_i32_0 = arith.constant 0 : i32
    return %arg1, %c0_i32 : i32, i32
  }
  func.func @transform_6(%arg0: i32, %arg1: i32) -> (i32, i32) {
    %c0_i32 = arith.constant 0 : i32
    %c0_i32_0 = arith.constant 0 : i32
    %c0_i32_1 = arith.constant 0 : i32
    return %c0_i32, %c0_i32_0 : i32, i32
  }
  func.func @transform_7(%arg0: i32, %arg1: i32) -> (i32, i32) {
    %c0_i32 = arith.constant 0 : i32
    %c0_i32_0 = arith.constant 0 : i32
    return %arg0, %c0_i32 : i32, i32
  }
}

</mosaic_0001>

<bundles_post_ra>
// kernel: decoder_layer.11
= control target key start
LH: loop header
LB: loop body
LE: loop exit
PB: predicated region body
PF: predicated region fallthrough
CT: control target
= control target key end

     0   :  { %vm23_vm0 = vcmask 261120   ;;  %v168_v15 = vmov 0.0   ;;  %vm169_vm1 = vmmov 0   ;;  %s234_s0 = inlined_call_operand.vmem [shape: f32[16,32], index: 0, kind: input, shape index: {}]   ;;  %s235_s3 = inlined_call_operand.vmem [shape: bf16[32,32], index: 3, kind: input, shape index: {}]   ;;  %s236_s1 = inlined_call_operand.vmem [shape: f32[1,32], index: 1, kind: input, shape index: {}]   ;;  %s237_s2 = inlined_call_operand.vmem [shape: f32[1,32], index: 2, kind: input, shape index: {}]   ;;  %s238_s4 = inlined_call_operand.vmem [shape: f32[1,32], index: 4, kind: input, shape index: {}]   ;;  %s239_s5 = inlined_call_operand.vmem [shape: f32[16,32], index: 5, kind: output, shape index: {}]  }
   0x1   :  { %v21_v0 = vld [vmem:[%s234_s0] sm:$0xff]  ;;  %v22_v1 = vld [vmem:[%s234_s0 + $0x8] sm:$0xff]  ;;  %152 = vmatprep.subr.bf16.mxu0 %v168_v15  ;;  %156 = vmatprep.mubr.msk.bf16.mxu0 %vm169_vm1, %v168_v15 }
   0x2   :  { %v24_v2 = vsel %vm23_vm0, %v21_v0, 0.0  ;;  %v27_v3 = vsel %vm23_vm0, %v22_v1, 0.0  ;;  %v162_v14 = vld [vmem:[%s235_s3] sm:$0xff]   ;;  %v163_v16 = vld [vmem:[%s235_s3 + $0x8] sm:$0xff]  }
   0x3   :  { %25 = vadd.xlane.f32.xlu0 %v24_v2  ;;  %153 = vmatpush3.bf16.msra.mxu0 %v162_v14  ;;  %v143_v25 = vld [vmem:[%s236_s1] ss:$0 sm:$0xff] }
   0x4   :  { %154 = vmatprep.subr.bf16.mxu0 %v168_v15  ;;  %v144_v29 = vld [vmem:[%s237_s2] ss:$0 sm:$0xff] }
   0x5   :  { %v145_v34 = vld [vmem:[%s238_s4] ss:$0 sm:$0xff] }
   0x7   :  { %28 = vadd.xlane.f32.xlu0 %v27_v3  ;;  %155 = vmatpush3.bf16.msra.mxu0 %v163_v16 }
  0x90   :  { %v26_v4 = vpop.xlane.xlu0 %25 }
  0x91   :  { %v31_v5 = vmul.f32 0.03125, %v26_v4 }
  0x93   :  { %v33_v6 = vsub.f32 %v21_v0, %v31_v5 }
  0x94   :  { %v29_v7 = vpop.xlane.xlu0 %28 }
  0x95   :  { %v32_v8 = vmul.f32 0.03125, %v29_v7  ;;  %v35_v9 = vmul.f32 %v33_v6, %v33_v6 }
  0x97   :  { %v34_v10 = vsub.f32 %v22_v1, %v32_v8  ;;  %v37_v11 = vsel %vm23_vm0, %v35_v9, 0.0 }
  0x98   :  { %38 = vadd.xlane.f32.xlu1 %v37_v11 }
  0x99   :  { %v36_v12 = vmul.f32 %v34_v10, %v34_v10 }
  0x9b   :  { %v40_v13 = vsel %vm23_vm0, %v36_v12, 0.0 }
  0x9c   :  { %41 = vadd.xlane.f32.xlu1 %v40_v13 }
 0x125   :  { %v39_v17 = vpop.xlane.xlu1 %38 }
 0x126   :  { %v43_v18 = vmul.f32 0.03125, %v39_v17 }
 0x128   :  { %v45_v19 = vadd.f32 1e-05, %v43_v18 }
 0x129   :  { %v42_v20 = vpop.xlane.xlu1 %41 }
 0x12a   :  { %164 = vrsqrt.f32 %v45_v19  ;;  %v44_v21 = vmul.f32 0.03125, %v42_v20 }
 0x12c   :  { %v46_v22 = vadd.f32 1e-05, %v44_v21 }
 0x12e   :  { %166 = vrsqrt.f32 %v46_v22 }
 0x134   :  { %v165_v23 = vpop.eup %164 }
 0x135   :  { %v49_v24 = vmul.f32 %v165_v23, %v33_v6 }
 0x137   :  { %v58_v28 = vmul.f32 %v143_v25, %v49_v24 }
 0x138   :  { %v167_v26 = vpop.eup %166 }
 0x139   :  { %v50_v27 = vmul.f32 %v167_v26, %v34_v10  ;;  %v67_v31 = vadd.f32 %v144_v29, %v58_v28 }
 0x13b   :  { %v59_v30 = vmul.f32 %v143_v25, %v50_v27 }
 0x13d   :  { %v68_v32 = vadd.f32 %v144_v29, %v59_v30 }
 0x13f   :  { %v69_v33 = vpack.c.bf16 %v68_v32, %v67_v31 }
 0x141   :  { %157 = vmatmul.mubr.msk.bf16.vlgmr.msra.gmra.mrb[0].mxu0 %vm23_vm0, %v69_v33 }
 0x214   :  { %v130_v35 = vpop.f32.mrb[0].mxu0 }
 0x215   :  { %v131_v36 = vadd.f32 %v145_v34, %v130_v35  ;;  %v158_v37 = vpop.f32.mrb[1].mxu0 }
 0x216   :  { %v133_v38 = vpop.f32.mrb[2].mxu0 }
 0x217   :  { %137 = vst.msk [vmem:[%s239_s5] sm:$0xff] %vm23_vm0, %v131_v36  ;;  %v134_v39 = vadd.f32 %v145_v34, %v133_v38  ;;  %v159_v40 = vpop.f32.mrb[3].mxu0 }
 0x219   :  { %138 = vst.msk [vmem:[%s239_s5 + $0x8] sm:$0xff] %vm23_vm0, %v134_v39 }

// kernel: decoder_layer.8
= control target key start
LH: loop header
LB: loop body
LE: loop exit
PB: predicated region body
PF: predicated region fallthrough
CT: control target
= control target key end

     0   :  { %vm23_vm0 = vcmask 261120   ;;  %v169_v15 = vmov 0.0   ;;  %vm170_vm1 = vmmov 0   ;;  %vm137_vm2 = vcmask 785408   ;;  %s233_s0 = inlined_call_operand.vmem [shape: f32[16,32], index: 0, kind: input, shape index: {}]   ;;  %s234_s3 = inlined_call_operand.vmem [shape: bf16[32,96], index: 3, kind: input, shape index: {}]   ;;  %s235_s1 = inlined_call_operand.vmem [shape: f32[1,32], index: 1, kind: input, shape index: {}]   ;;  %s236_s2 = inlined_call_operand.vmem [shape: f32[1,32], index: 2, kind: input, shape index: {}]   ;;  %s237_s4 = inlined_call_operand.vmem [shape: f32[1,96], index: 4, kind: input, shape index: {}]   ;;  %s238_s5 = inlined_call_operand.vmem [shape: f32[16,96], index: 5, kind: output, shape index: {}]  }
   0x1   :  { %v21_v0 = vld [vmem:[%s233_s0] sm:$0xff]  ;;  %v22_v1 = vld [vmem:[%s233_s0 + $0x8] sm:$0xff]  ;;  %153 = vmatprep.subr.bf16.mxu0 %v169_v15  ;;  %157 = vmatprep.mubr.msk.bf16.mxu0 %vm170_vm1, %v169_v15 }
   0x2   :  { %v24_v2 = vsel %vm23_vm0, %v21_v0, 0.0  ;;  %v27_v3 = vsel %vm23_vm0, %v22_v1, 0.0  ;;  %v163_v14 = vld [vmem:[%s234_s3] sm:$0xff]   ;;  %v164_v16 = vld [vmem:[%s234_s3 + $0x8] sm:$0xff]  }
   0x3   :  { %25 = vadd.xlane.f32.xlu0 %v24_v2  ;;  %154 = vmatpush3.bf16.msra.mxu0 %v163_v14  ;;  %v144_v25 = vld [vmem:[%s235_s1] ss:$0 sm:$0xff] }
   0x4   :  { %155 = vmatprep.subr.bf16.mxu0 %v169_v15  ;;  %v145_v29 = vld [vmem:[%s236_s2] ss:$0 sm:$0xff] }
   0x5   :  { %v146_v34 = vld [vmem:[%s237_s4] ss:$0 sm:$0xff] }
   0x7   :  { %28 = vadd.xlane.f32.xlu0 %v27_v3  ;;  %156 = vmatpush3.bf16.msra.mxu0 %v164_v16 }
  0x90   :  { %v26_v4 = vpop.xlane.xlu0 %25 }
  0x91   :  { %v31_v5 = vmul.f32 0.03125, %v26_v4 }
  0x93   :  { %v33_v6 = vsub.f32 %v21_v0, %v31_v5 }
  0x94   :  { %v29_v7 = vpop.xlane.xlu0 %28 }
  0x95   :  { %v32_v8 = vmul.f32 0.03125, %v29_v7  ;;  %v35_v9 = vmul.f32 %v33_v6, %v33_v6 }
  0x97   :  { %v34_v10 = vsub.f32 %v22_v1, %v32_v8  ;;  %v37_v11 = vsel %vm23_vm0, %v35_v9, 0.0 }
  0x98   :  { %38 = vadd.xlane.f32.xlu1 %v37_v11 }
  0x99   :  { %v36_v12 = vmul.f32 %v34_v10, %v34_v10 }
  0x9b   :  { %v40_v13 = vsel %vm23_vm0, %v36_v12, 0.0 }
  0x9c   :  { %41 = vadd.xlane.f32.xlu1 %v40_v13 }
 0x125   :  { %v39_v17 = vpop.xlane.xlu1 %38 }
 0x126   :  { %v43_v18 = vmul.f32 0.03125, %v39_v17 }
 0x128   :  { %v45_v19 = vadd.f32 1e-05, %v43_v18 }
 0x129   :  { %v42_v20 = vpop.xlane.xlu1 %41 }
 0x12a   :  { %165 = vrsqrt.f32 %v45_v19  ;;  %v44_v21 = vmul.f32 0.03125, %v42_v20 }
 0x12c   :  { %v46_v22 = vadd.f32 1e-05, %v44_v21 }
 0x12e   :  { %167 = vrsqrt.f32 %v46_v22 }
 0x134   :  { %v166_v23 = vpop.eup %165 }
 0x135   :  { %v49_v24 = vmul.f32 %v166_v23, %v33_v6 }
 0x137   :  { %v58_v28 = vmul.f32 %v144_v25, %v49_v24 }
 0x138   :  { %v168_v26 = vpop.eup %167 }
 0x139   :  { %v50_v27 = vmul.f32 %v168_v26, %v34_v10  ;;  %v67_v31 = vadd.f32 %v145_v29, %v58_v28 }
 0x13b   :  { %v59_v30 = vmul.f32 %v144_v25, %v50_v27 }
 0x13d   :  { %v68_v32 = vadd.f32 %v145_v29, %v59_v30 }
 0x13f   :  { %v69_v33 = vpack.c.bf16 %v68_v32, %v67_v31 }
 0x141   :  { %158 = vmatmul.mubr.msk.bf16.vlgmr.msra.gmra.mrb[0].mxu0 %vm23_vm0, %v69_v33 }
 0x214   :  { %v130_v35 = vpop.f32.mrb[0].mxu0 }
 0x215   :  { %v131_v36 = vadd.f32 %v146_v34, %v130_v35  ;;  %v159_v37 = vpop.f32.mrb[1].mxu0 }
 0x216   :  { %v133_v38 = vpop.f32.mrb[2].mxu0 }
 0x217   :  { %138 = vst.msk [vmem:[%s238_s5] sm:$0xff] %vm137_vm2, %v131_v36  ;;  %v134_v39 = vadd.f32 %v146_v34, %v133_v38  ;;  %v160_v40 = vpop.f32.mrb[3].mxu0 }
 0x219   :  { %139 = vst.msk [vmem:[%s238_s5 + $0x8] sm:$0xff] %vm137_vm2, %v134_v39 }

// kernel: decoder_layer.10
= control target key start
LH: loop header
LB: loop body
LE: loop exit
PB: predicated region body
PF: predicated region fallthrough
CT: control target
= control target key end

     0   :  { %vm22_vm0 = vcmask 261120   ;;  %v138_v0 = vmov 0.0   ;;  %vm139_vm1 = vmmov 0   ;;  %s199_s1 = inlined_call_operand.vmem [shape: bf16[32,32], index: 1, kind: input, shape index: {}]   ;;  %s200_s0 = inlined_call_operand.vmem [shape: f32[16,32], index: 0, kind: input, shape index: {}]   ;;  %s201_s2 = inlined_call_operand.vmem [shape: f32[1,32], index: 2, kind: input, shape index: {}]   ;;  %s202_s3 = inlined_call_operand.vmem [shape: f32[16,32], index: 3, kind: input, shape index: {}]   ;;  %s203_s4 = inlined_call_operand.vmem [shape: f32[16,32], index: 4, kind: output, shape index: {}]  }
   0x1   :  { %126 = vmatprep.subr.bf16.mxu0 %v138_v0  ;;  %v136_v1 = vld [vmem:[%s199_s1] sm:$0xff]   ;;  %130 = vmatprep.mubr.msk.bf16.mxu0 %vm139_vm1, %v138_v0  ;;  %23 = vst.msk [vmem:[#allocation2] sm:$0xff] %vm22_vm0, %v138_v0  ;;  %24 = vst.msk [vmem:[#allocation2 + $0x8] sm:$0xff] %vm22_vm0, %v138_v0  ;;  %v137_v2 = vld [vmem:[%s199_s1 + $0x8] sm:$0xff]  }
   0x2   :  { %127 = vmatpush3.bf16.msra.mxu0 %v136_v1  ;;  %v27_v3 = vld [vmem:[%s200_s0] sm:$0xff]  ;;  %v28_v4 = vld [vmem:[%s200_s0 + $0x8] sm:$0xff] }
   0x3   :  { %128 = vmatprep.subr.bf16.mxu0 %v138_v0  ;;  %v29_v5 = vpack.c.bf16 %v28_v4, %v27_v3  ;;  %v122_v14 = vld [vmem:[%s201_s2] ss:$0 sm:$0xff]  ;;  %v110_v19 = vld [vmem:[%s202_s3 + $0x8] sm:$0xff] }
   0x4   :  { %v109_v16 = vld [vmem:[%s202_s3] sm:$0xff] }
   0x6   :  { %129 = vmatpush3.bf16.msra.mxu0 %v137_v2 }
   0x8   :  { %v25_v6 = vld [vmem:[#allocation2] sm:$0xff]  ;;  %v26_v8 = vld [vmem:[#allocation2 + $0x8] sm:$0xff] }
   0x9   :  { %131 = vmatmul.mubr.msk.bf16.vlgmr.msra.gmra.mrb[0].mxu0 %vm22_vm0, %v29_v5 }
  0xdc   :  { %v84_v7 = vpop.f32.mrb[0].mxu0 }
  0xdd   :  { %v91_v9 = vadd.f32 %v84_v7, %v25_v6  ;;  %v132_v10 = vpop.f32.mrb[1].mxu0 }
  0xde   :  { %v87_v11 = vpop.f32.mrb[2].mxu0 }
  0xdf   :  { %93 = vst.msk [vmem:[#allocation2] sm:$0xff] %vm22_vm0, %v91_v9  ;;  %v92_v12 = vadd.f32 %v87_v11, %v26_v8  ;;  %v133_v13 = vpop.f32.mrb[3].mxu0 }
  0xe1   :  { %94 = vst.msk [vmem:[#allocation2 + $0x8] sm:$0xff] %vm22_vm0, %v92_v12 }
  0xe6   :  { %v98_v15 = vld [vmem:[#allocation2] sm:$0xff] }
  0xe7   :  { %v107_v17 = vadd.f32 %v122_v14, %v98_v15 }
  0xe8   :  { %v99_v18 = vld [vmem:[#allocation2 + $0x8] sm:$0xff] }
  0xe9   :  { %v111_v20 = vadd.f32 %v109_v16, %v107_v17  ;;  %v108_v21 = vadd.f32 %v122_v14, %v99_v18 }
  0xeb   :  { %113 = vst.msk [vmem:[%s203_s4] sm:$0xff] %vm22_vm0, %v111_v20  ;;  %v112_v22 = vadd.f32 %v110_v19, %v108_v21 }
  0xed   :  { %114 = vst.msk [vmem:[%s203_s4 + $0x8] sm:$0xff] %vm22_vm0, %v112_v22 }

// kernel: decoder_layer.9
= control target key start
LH: loop header
LB: loop body
LE: loop exit
PB: predicated region body
PF: predicated region fallthrough
CT: control target
= control target key end

     0   :  { %11 = vsyncpa [#allocation3], 0  ;;  %s1295_s0 = inlined_call_operand.vmem [shape: f32[2,4,8,8], index: 0, kind: input, shape index: {}]   ;;  %s1296_s1 = inlined_call_operand.vmem [shape: f32[2,4,8,8], index: 1, kind: input, shape index: {}]   ;;  %s1297_s2 = inlined_call_operand.vmem [shape: f32[2,4,8,8], index: 2, kind: input, shape index: {}]   ;;  %s1298_s3 = inlined_call_operand.vmem [shape: f32[1,1,8,8], index: 3, kind: input, shape index: {}]   ;;  %s1299_s4 = inlined_call_operand.vmem [shape: f32[2,4,8,8], index: 4, kind: output, shape index: {0}]   ;;  %s1300_s5 = inlined_call_operand.hbm [shape: f32[2,4,8,8], index: 5, kind: output, shape index: {1}]  }
   0x1   :  { %13 = vsyncpa [#allocation3 + $0x1], 0  ;;  %s1118_s18 = smov 0   ;;  %s1120_s19 = smov 0  }
   0x2   :  { %s1122_s20 = smov 0   ;;  %s1124_s21 = smov 0  }
   0x3 LB: > { %s1139_s22 = sadd.s32 4294967295, %s1081_s21   ;;  %s865_s23 = sadd.s32 4294967294, %s1081_s21   ;;  %s1081_s21 = sphi %s1124_s21, %s1306_s21   ;;  %s1077_s20 = sphi %s1122_s20, %s1305_s20   ;;  %s1073_s19 = sphi %s1120_s19, %s1304_s19   ;;  %s1069_s18 = sphi %s1118_s18, %s1303_s18  }
   0x4   : > { %s1143_s24 = sadd.s32 1, %s1081_s21   ;;  %s151_s25 = sadd.s32 1, %s1077_s20 }
   0x5   : > { %s148_s26 = ssub.s32 %s1081_s21, %s1143_s24  ;;  %p161_p0 = scmp.ne.s32.totalorder %s1077_s20, %s1073_s19 }
   0x6   : > { %p149_p1 = scmp.eq.s32.totalorder %s148_s26, 0  ;;  %p162_p2 = scmp.eq.s32.totalorder %s1139_s22, 1 }
   0x7   : > { %p167_p3 = scmp.ne.s32.totalorder %s1073_s19, %s1069_s18  ;;  %p168_p4 = scmp.eq.s32.totalorder %s865_s23, 1 }
   0x8   : > { %s1154_s27 = scalar_select %p149_p1, %s1077_s20, %s151_s25  }
   0x9   : > { %p1156_p5 = por %p162_p2, %p161_p0  ;;  %p1160_p6 = por %p168_p4, %p167_p3 }
   0xa   : > { %p868_p7 = scmp.ge.s32.totalorder %s1081_s21, 1  ;;  %p213_p8 = scmp.lt.s32.totalorder %s1081_s21, 3 }
   0xc   : > { %p214_p9 = pnand %p868_p7, %p213_p8 }
   0xd   : > { %p256_p10 = scmp.lt.s32.totalorder (!%p214_p9), %s1139_s22, 1  ;;  %v1083_v0 = vmov (!%p214_p9), 0.0   ;;  %vm1084_vm0 = vmmov (!%p214_p9), 0   ;;  %vm306_vm1 = vcmask (!%p214_p9), 64512   ;;  %v277_v25 = vld [vmem:[%s1298_s3] sm:$0xff] (!%p214_p9)  ;;  %vm546_vm2 = vcmask (!%p214_p9), 1043456  }
   0xe   : > { %217 = sbr.rel (%p214_p9) target bundleno = 793 (0x319), region = 36  ;;  %912 = vmatprep.subr.bf16.mxu0 (!%p214_p9), %v1083_v0  ;;  %918 = vmatprep.subr.bf16.mxu1 (!%p214_p9), %v1083_v0  ;;  %s253_s23 = sand.u32 (!%p214_p9), 1, %s1073_s19  }
   0xf   : > { %914 = vmatprep.mubr.msk.bf16.mxu0 (!%p214_p9), %vm1084_vm0, %v1083_v0  ;;  %920 = vmatprep.mubr.msk.bf16.mxu1 (!%p214_p9), %vm1084_vm0, %v1083_v0  ;;  %s869_s25 = sshll.u32 (!%p214_p9), %s253_s23, 5  ;;  %s1246_s11 = scalar_lea.sflag (!%p214_p9), [#allocation3], %s253_s23 }
  0x10   : > { %s255_s26 = scalar_lea.vmem (!%p214_p9), [#allocation2], %s869_s25 }
  0x11   : > { %s754_s7 = sshll.u32 (!%p214_p9), %s255_s26, 4  ;;  %s1242_s7 = int_to_ptr.vmem [resolvable:$true] %s754_s7 }
  0x15   : > { %s257_s30 = scalar_select %p256_p10, %s1139_s22, 1 }
  0x17   : > { %s1174_s6 = sshll.u32 %s257_s30, 5  ;;  %s895_s30 = sshll.u32 %s1139_s22, 9 }
  0x18   : > { %s265_s9 = scalar_lea.vmem %s1296_s1, %s1174_s6  ;;  %s260_s12 = scalar_lea.vmem %s1295_s0, %s1174_s6 }
  0x19   : > { %v290_v1 = vld [vmem:[%s265_s9] sm:$0xff]  ;;  %v291_v2 = vld [vmem:[%s265_s9 + $0x8] sm:$0xff]  ;;  %v292_v7 = vld [vmem:[%s265_s9 + $0x10] sm:$0xff]  ;;  %s270_s17 = scalar_lea.vmem %s1297_s2, %s1174_s6  ;;  %s1240_s10 = scalar_lea.hbm %s1300_s5, %s895_s30 }
  0x1a   : > { %v278_v3 = vld [vmem:[%s260_s12] sm:$0xff]  ;;  %v294_v4 = vpack.c.bf16 %v290_v1, %v290_v1  ;;  %v295_v5 = vpack.c.bf16 %v291_v2, %v291_v2  ;;  %v279_v6 = vld [vmem:[%s260_s12 + $0x8] sm:$0xff]  ;;  %v293_v8 = vld [vmem:[%s265_s9 + $0x18] sm:$0xff]  ;;  %v296_v13 = vpack.c.bf16 %v292_v7, %v292_v7  ;;  %s1085_s22 = smov [#allocation2]  }
  0x1b   : > { %v282_v11 = vmul.f32 0.35355338, %v278_v3  ;;  %v283_v12 = vmul.f32 0.35355338, %v279_v6  ;;  %v297_v14 = vpack.c.bf16 %v293_v8, %v293_v8  ;;  %v280_v17 = vld [vmem:[%s260_s12 + $0x10] sm:$0xff]  ;;  %v281_v18 = vld [vmem:[%s260_s12 + $0x18] sm:$0xff] }
  0x1c   : > { %v311_v9 = vsel %vm306_vm1, %v294_v4, 0  ;;  %v357_v10 = vsel %vm306_vm1, %v295_v5, 0  ;;  %v403_v19 = vsel %vm306_vm1, %v296_v13, 0  ;;  %v284_v21 = vmul.f32 0.35355338, %v280_v17  ;;  %v298_v7 = vld [vmem:[%s270_s17] sm:$0xff] }
  0x1d   : > { %913 = vmatpush3.bf16.xpose.msra.mxu0 %v311_v9  ;;  %919 = vmatpush3.bf16.xpose.msra.mxu1 %v357_v10  ;;  %v286_v15 = vpack.c.bf16 %v282_v11, %v282_v11  ;;  %v287_v16 = vpack.c.bf16 %v283_v12, %v283_v12  ;;  %v449_v20 = vsel %vm306_vm1, %v297_v14, 0  ;;  %v285_v22 = vmul.f32 0.35355338, %v281_v18  ;;  %v299_v10 = vld [vmem:[%s270_s17 + $0x8] sm:$0xff]  ;;  %v300_v13 = vld [vmem:[%s270_s17 + $0x10] sm:$0xff]  ;;  %s1019_s12 = scalar_lea.vmem %s1242_s7, 512 }
  0x1e   : > { %924 = vmatprep.subr.bf16.mxu0 %v1083_v0  ;;  %930 = vmatprep.subr.bf16.mxu1 %v1083_v0  ;;  %v288_v23 = vpack.c.bf16 %v284_v21, %v284_v21  ;;  %v302_v8 = vpack.c.bf16 %v298_v7, %v298_v7  ;;  %v303_v11 = vpack.c.bf16 %v299_v10, %v299_v10  ;;  %p1020_p11 = scmp.ne.s32.totalorder %s1242_s7, %s1019_s12  ;;  %s1023_s13 = sshll.u32 %s1085_s22, 4  ;;  %s1024_s13 = int_to_ptr.vmem [resolvable:$false] %s1023_s13 }
  0x1f   : > { %v289_v24 = vpack.c.bf16 %v285_v22, %v285_v22  ;;  %v304_v14 = vpack.c.bf16 %v300_v13, %v300_v13  ;;  %s1025_s14 = scalar_lea.vmem %s1024_s13, 1024  ;;  %p1026_p0 = scmp.lt.s32.totalorder %s1242_s7, %s1024_s13 }
  0x20   : > { %v548_v9 = vsel %vm546_vm2, %v302_v8, 0  ;;  %v594_v12 = vsel %vm546_vm2, %v303_v11, 0  ;;  %p1021_p12 = pnand %p1020_p11, %p1156_p5  ;;  %p1027_p1 = scmp.lt.s32.totalorder %s1025_s14, %s1019_s12 }
  0x22   : > { %p1022_p13 = pneg %p1021_p12  ;;  %p1028_p2 = por %p1027_p1, %p1026_p0 }
  0x24   : > { %915 = vmatmul.mubr.msk.bf16.vlgmr.msra.gmra.mrb[0].mxu0 %vm306_vm1, %v286_v15  ;;  %921 = vmatmul.mubr.msk.bf16.vlgmr.msra.gmra.mrb[0].mxu1 %vm306_vm1, %v287_v16  ;;  %v640_v15 = vsel %vm546_vm2, %v304_v14, 0  ;;  %v301_v16 = vld [vmem:[%s270_s17 + $0x18] sm:$0xff]  ;;  %p1029_p3 = pnand %p1028_p2, %p1022_p13 }
  0x25   : > { %925 = vmatpush3.bf16.xpose.msra.mxu0 %v403_v19  ;;  %931 = vmatpush3.bf16.xpose.msra.mxu1 %v449_v20  ;;  %v305_v17 = vpack.c.bf16 %v301_v16, %v301_v16 }
  0x26   : > { %926 = vmatprep.mubr.msk.bf16.mxu0 %vm1084_vm0, %v1083_v0  ;;  %932 = vmatprep.mubr.msk.bf16.mxu1 %vm1084_vm0, %v1083_v0 }
  0x27   : > { %936 = vmatprep.subr.bf16.mxu0 %v1083_v0  ;;  %942 = vmatprep.subr.bf16.mxu1 %v1083_v0  ;;  %v686_v18 = vsel %vm546_vm2, %v305_v17, 0 }
  0x2c   : > { %927 = vmatmul.mubr.msk.bf16.vlgmr.msra.gmra.mrb[4].mxu0 %vm306_vm1, %v288_v23  ;;  %933 = vmatmul.mubr.msk.bf16.vlgmr.msra.gmra.mrb[4].mxu1 %vm306_vm1, %v289_v24 }
  0x2d   : > { %938 = vmatprep.mubr.msk.bf16.mxu0 %vm1084_vm0, %v1083_v0  ;;  %944 = vmatprep.mubr.msk.bf16.mxu1 %vm1084_vm0, %v1083_v0 }
  0x2e   : > { %937 = vmatpush3.bf16.msra.mxu0 %v548_v9  ;;  %943 = vmatpush3.bf16.msra.mxu1 %v594_v12 }
  0x2f   : > { %948 = vmatprep.subr.bf16.mxu0 %v1083_v0  ;;  %954 = vmatprep.subr.bf16.mxu1 %v1083_v0 }
  0xf7   : > { %v347_v26 = vpop.f32.mrb[0].mxu0  ;;  %v393_v27 = vpop.f32.mrb[0].mxu1 }
  0xf8   : > { %v348_v28 = vadd.f32 %v347_v26, %v277_v25  ;;  %v916_v29 = vpop.f32.mrb[1].mxu0  ;;  %v394_v30 = vadd.f32 %v393_v27, %v277_v25  ;;  %v922_v31 = vpop.f32.mrb[1].mxu1 }
  0xf9   : > { %v350_v32 = vpop.f32.mrb[2].mxu0  ;;  %v396_v33 = vpop.f32.mrb[2].mxu1 }
  0xfa   : > { %v917_v34 = vpop.f32.mrb[3].mxu0  ;;  %v491_v35 = vsel %vm306_vm1, %v348_v28, -inf  ;;  %v923_v36 = vpop.f32.mrb[3].mxu1  ;;  %v494_v37 = vsel %vm306_vm1, %v394_v30, -inf }
  0xfb   : > { %492 = vmax.xlane.f32.xlu0 %v491_v35 }
  0xff   : > { %495 = vmax.xlane.f32.xlu0 %v494_v37  ;;  %v439_v38 = vpop.f32.mrb[4].mxu0  ;;  %v485_v39 = vpop.f32.mrb[4].mxu1 }
 0x100   : > { %v440_v40 = vadd.f32 %v439_v38, %v277_v25  ;;  %v928_v41 = vpop.f32.mrb[5].mxu0  ;;  %v486_v42 = vadd.f32 %v485_v39, %v277_v25  ;;  %v934_v43 = vpop.f32.mrb[5].mxu1 }
 0x101   : > { %v442_v44 = vpop.f32.mrb[6].mxu0  ;;  %v488_v45 = vpop.f32.mrb[6].mxu1 }
 0x102   : > { %v929_v46 = vpop.f32.mrb[7].mxu0  ;;  %v497_v47 = vsel %vm306_vm1, %v440_v40, -inf  ;;  %v935_v48 = vpop.f32.mrb[7].mxu1  ;;  %v500_v49 = vsel %vm306_vm1, %v486_v42, -inf }
 0x103   : > { %498 = vmax.xlane.f32.xlu1 %v497_v47 }
 0x107   : > { %501 = vmax.xlane.f32.xlu1 %v500_v49 }
 0x188   : > { %v493_v50 = vpop.xlane.xlu0 %492 }
 0x189   : > { %v503_v51 = vsub.f32 %v348_v28, %v493_v50 }
 0x18b   : > { %v507_v52 = vmul.f32 1.442695, %v503_v51 }
 0x18c   : > { %v496_v53 = vpop.xlane.xlu0 %495 }
 0x18d   : > { %1003 = vpow2.f32 %v507_v52  ;;  %v504_v54 = vsub.f32 %v394_v30, %v496_v53 }
 0x18f   : > { %v509_v55 = vmul.f32 1.442695, %v504_v54 }
 0x190   : > { %v499_v56 = vpop.xlane.xlu1 %498 }
 0x191   : > { %1005 = vpow2.f32 %v509_v55  ;;  %v505_v57 = vsub.f32 %v440_v40, %v499_v56 }
 0x193   : > { %v511_v58 = vmul.f32 1.442695, %v505_v57 }
 0x194   : > { %v502_v59 = vpop.xlane.xlu1 %501 }
 0x195   : > { %1007 = vpow2.f32 %v511_v58  ;;  %v506_v60 = vsub.f32 %v486_v42, %v502_v59 }
 0x197   : > { %v1004_v61 = vpop.eup %1003  ;;  %v513_v62 = vmul.f32 1.442695, %v506_v60 }
 0x198   : > { %v515_v63 = vsel %vm306_vm1, %v1004_v61, 0.0 }
 0x199   : > { %1009 = vpow2.f32 %v513_v62  ;;  %516 = vadd.xlane.f32.xlu0 %v515_v63 }
 0x19b   : > { %v1006_v1 = vpop.eup %1005 }
 0x19c   : > { %v518_v2 = vsel %vm306_vm1, %v1006_v1, 0.0 }
 0x19d   : > { %519 = vadd.xlane.f32.xlu1 %v518_v2 }
 0x19f   : > { %v1008_v3 = vpop.eup %1007 }
 0x1a0   : > { %v521_v4 = vsel %vm306_vm1, %v1008_v3, 0.0 }
 0x1a1   : > { %522 = vadd.xlane.f32.xlu0 %v521_v4 }
 0x1a3   : > { %v1010_v5 = vpop.eup %1009 }
 0x1a4   : > { %v524_v6 = vsel %vm306_vm1, %v1010_v5, 0.0 }
 0x1a5   : > { %525 = vadd.xlane.f32.xlu1 %v524_v6 }
 0x226   : > { %v517_v19 = vpop.xlane.xlu0 %516 }
 0x227   : > { %1011 = vrcp.f32 %v517_v19 }
 0x22a   : > { %v520_v20 = vpop.xlane.xlu1 %519 }
 0x22b   : > { %1013 = vrcp.f32 %v520_v20 }
 0x22e   : > { %v523_v21 = vpop.xlane.xlu0 %522 }
 0x22f   : > { %1015 = vrcp.f32 %v523_v21 }
 0x231   : > { %v1012_v22 = vpop.eup %1011 }
 0x232   : > { %v531_v23 = vmul.f32 %v1012_v22, %v1004_v61  ;;  %v526_v24 = vpop.xlane.xlu1 %525 }
 0x233   : > { %1017 = vrcp.f32 %v526_v24 }
 0x234   : > { %535 = vst.msk [vmem:[%s255_s26] sm:$0xff] %vm306_vm1, %v531_v23  ;;  %v539_v25 = vpack.c.bf16 %v531_v23, %v531_v23 }
 0x235   : > { %v1014_v26 = vpop.eup %1013 }
 0x236   : > { %v532_v27 = vmul.f32 %v1014_v26, %v1006_v1  ;;  %939 = vmatmul.mubr.msk.bf16.vlgmr.msra.gmra.mrb[8].mxu0 %vm306_vm1, %v539_v25 }
 0x237   : > { %949 = vmatpush3.bf16.msra.mxu0 %v640_v15  ;;  %950 = vmatprep.mubr.msk.bf16.mxu0 %vm1084_vm0, %v1083_v0 }
 0x238   : > { %536 = vst.msk [vmem:[%s255_s26 + $0x8] sm:$0xff] %vm306_vm1, %v532_v27  ;;  %v540_v28 = vpack.c.bf16 %v532_v27, %v532_v27 }
 0x239   : > { %v1016_v29 = vpop.eup %1015 }
 0x23a   : > { %v533_v30 = vmul.f32 %v1016_v29, %v1008_v3  ;;  %945 = vmatmul.mubr.msk.bf16.vlgmr.msra.gmra.mrb[8].mxu1 %vm306_vm1, %v540_v28 }
 0x23b   : > { %955 = vmatpush3.bf16.msra.mxu1 %v686_v18  ;;  %956 = vmatprep.mubr.msk.bf16.mxu1 %vm1084_vm0, %v1083_v0 }
 0x23c   : > { %537 = vst.msk [vmem:[%s255_s26 + $0x10] sm:$0xff] %vm306_vm1, %v533_v30  ;;  %v541_v31 = vpack.c.bf16 %v533_v30, %v533_v30 }
 0x23d   : > { %v1018_v32 = vpop.eup %1017 }
 0x23e   : > { %v534_v33 = vmul.f32 %v1018_v32, %v1010_v5  ;;  %951 = vmatmul.mubr.msk.bf16.vlgmr.msra.gmra.mrb[12].mxu0 %vm306_vm1, %v541_v31 }
 0x240   : > { %538 = vst.msk [vmem:[%s255_s26 + $0x18] sm:$0xff] %vm306_vm1, %v534_v33  ;;  %v542_v34 = vpack.c.bf16 %v534_v33, %v534_v33 }
 0x242   : > { %957 = vmatmul.mubr.msk.bf16.vlgmr.msra.gmra.mrb[12].mxu1 %vm306_vm1, %v542_v34 }
 0x243   : > { %1032 = shalt.err (!%p1029_p3)
}
 0x244   : > { %s1033_s15 = scalar_lea.hbm %s1240_s10, 512  ;;  %s1037_s23 = scalar_lea.hbm %s1300_s5, 1024 }
 0x245   : > { %p1034_p4 = scmp.ne.s32.totalorder %s1240_s10, %s1033_s15  ;;  %p1038_p9 = scmp.lt.u32.totalorder %s1240_s10, %s1300_s5 }
 0x246   : > { %p1039_p10 = scmp.lt.u32.totalorder %s1037_s23, %s1033_s15  ;;  %p1041_p12 = scmp.lt.u32.totalorder %s1033_s15, %s1240_s10 }
 0x247   : > { %p1035_p7 = pnand %p1034_p4, %p1156_p5 }
 0x248   : > { %p1040_p11 = por %p1039_p10, %p1038_p9 }
 0x249   : > { %p1036_p8 = pneg %p1035_p7 }
 0x24a   : > { %p1042_p13 = por %p1041_p12, %p1040_p11 }
 0x24c   : > { %p1043_p0 = pnand %p1042_p13, %p1036_p8 }
 0x24e   : > { %1046 = shalt.err (!%p1043_p0)
}
 0x24f   : > { %s1086_s30 = smov 128   ;;  %s1087_s8 = smov 8  }
 0x250   : > { %960 = dma.vmem_to_hbm [thread:$0]  (%p1156_p5), %s1242_s7, 512, %s1240_s10, %s1246_s11, %s1086_s30, %s1086_s30, %s1087_s8  }
 0x251   : > { %s275_s22 = scalar_lea.vmem %s1299_s4, %s1174_s6 }
 0x309   : > { %v584_v0 = vpop.f32.mrb[8].mxu0 }
 0x30a   : > { %728 = vst.msk [vmem:[%s275_s22] sm:$0xff] %vm306_vm1, %v584_v0  ;;  %v940_v35 = vpop.f32.mrb[9].mxu0 }
 0x30b   : > { %v587_v36 = vpop.f32.mrb[10].mxu0 }
 0x30c   : > { %v941_v37 = vpop.f32.mrb[11].mxu0 }
 0x30d   : > { %v630_v38 = vpop.f32.mrb[8].mxu1 }
 0x30e   : > { %729 = vst.msk [vmem:[%s275_s22 + $0x8] sm:$0xff] %vm306_vm1, %v630_v38  ;;  %v946_v39 = vpop.f32.mrb[9].mxu1 }
 0x30f   : > { %v633_v40 = vpop.f32.mrb[10].mxu1 }
 0x310   : > { %v947_v41 = vpop.f32.mrb[11].mxu1 }
 0x311   : > { %v676_v42 = vpop.f32.mrb[12].mxu0 }
 0x312   : > { %730 = vst.msk [vmem:[%s275_s22 + $0x10] sm:$0xff] %vm306_vm1, %v676_v42  ;;  %v952_v43 = vpop.f32.mrb[13].mxu0 }
 0x313   : > { %v679_v44 = vpop.f32.mrb[14].mxu0 }
 0x314   : > { %v953_v45 = vpop.f32.mrb[15].mxu0 }
 0x315   : > { %v722_v46 = vpop.f32.mrb[12].mxu1 }
 0x316   : > { %731 = vst.msk [vmem:[%s275_s22 + $0x18] sm:$0xff] %vm306_vm1, %v722_v46  ;;  %v958_v47 = vpop.f32.mrb[13].mxu1 }
 0x317   : > { %v725_v48 = vpop.f32.mrb[14].mxu1 }
 0x318   : > { %v959_v49 = vpop.f32.mrb[15].mxu1 }
 0x319 PF: > { %p966_p5 = scmp.ge.s32.totalorder %s1081_s21, 2  ;;  %s777_s28 = sand.u32 1, %s1069_s18  }
 0x31a   : > { %s778_s6 = scalar_lea.sflag [#allocation3], %s777_s28 }
 0x31b   : > { %p963_p1 = pnand %p966_p5, %p1160_p6 }
 0x31d   : > { %1064 = dma.done.wait (!%p963_p1), %s778_s6, 512  }
 0x31e   : > { %1066 = vsyncadd (!%p963_p1), %s778_s6, 4294966784  ;;  %p16_p2 = scmp.ge.s32.totalorder %s1143_s24, 4   ;;  %s1303_s18 = smov %s1073_s19 }
 0x31f   : > { %s1304_s19 = smov %s1077_s20  ;;  %s1305_s20 = smov %s1154_s27 }
 0x320   : > { %s1306_s21 = smov %s1143_s24  ;;  %18 = sbr.rel (!%p16_p2) target bundleno = 3 (0x3), region = 89 }
 0x327   :  { %783 = vsyncpa [#allocation3], 1 }
 0x328   :  { %785 = vsyncpa [#allocation3 + $0x1], 1 }

// kernel: decoder_layer.12
= control target key start
LH: loop header
LB: loop body
LE: loop exit
PB: predicated region body
PF: predicated region fallthrough
CT: control target
= control target key end

     0   :  { %vm19_vm0 = vcmask 523264   ;;  %v132_v0 = vmov 0.0   ;;  %vm133_vm1 = vmmov 0   ;;  %vm43_vm2 = vcmask 261120   ;;  %s181_s1 = inlined_call_operand.vmem [shape: bf16[32,64], index: 1, kind: input, shape index: {}]   ;;  %s182_s0 = inlined_call_operand.vmem [shape: f32[16,32], index: 0, kind: input, shape index: {}]   ;;  %s183_s2 = inlined_call_operand.vmem [shape: f32[1,64], index: 2, kind: input, shape index: {}]   ;;  %s184_s3 = inlined_call_operand.vmem [shape: f32[16,64], index: 3, kind: output, shape index: {}]  }
   0x1   :  { %120 = vmatprep.subr.bf16.mxu0 %v132_v0  ;;  %v130_v1 = vld [vmem:[%s181_s1] sm:$0xff]   ;;  %124 = vmatprep.mubr.msk.bf16.mxu0 %vm133_vm1, %v132_v0  ;;  %20 = vst.msk [vmem:[#allocation2] sm:$0xff] %vm19_vm0, %v132_v0  ;;  %21 = vst.msk [vmem:[#allocation2 + $0x8] sm:$0xff] %vm19_vm0, %v132_v0  ;;  %v131_v2 = vld [vmem:[%s181_s1 + $0x8] sm:$0xff]  }
   0x2   :  { %121 = vmatpush3.bf16.msra.mxu0 %v130_v1  ;;  %v24_v3 = vld [vmem:[%s182_s0] sm:$0xff]  ;;  %v25_v4 = vld [vmem:[%s182_s0 + $0x8] sm:$0xff] }
   0x3   :  { %122 = vmatprep.subr.bf16.mxu0 %v132_v0  ;;  %v26_v5 = vpack.c.bf16 %v25_v4, %v24_v3  ;;  %v116_v14 = vld [vmem:[%s183_s2] ss:$0 sm:$0xff] }
   0x6   :  { %123 = vmatpush3.bf16.msra.mxu0 %v131_v2 }
   0x8   :  { %v22_v6 = vld [vmem:[#allocation2] sm:$0xff]  ;;  %v23_v8 = vld [vmem:[#allocation2 + $0x8] sm:$0xff] }
   0x9   :  { %125 = vmatmul.mubr.msk.bf16.vlgmr.msra.gmra.mrb[0].mxu0 %vm43_vm2, %v26_v5 }
  0xdc   :  { %v81_v7 = vpop.f32.mrb[0].mxu0 }
  0xdd   :  { %v88_v9 = vadd.f32 %v81_v7, %v22_v6  ;;  %v126_v10 = vpop.f32.mrb[1].mxu0 }
  0xde   :  { %v84_v11 = vpop.f32.mrb[2].mxu0 }
  0xdf   :  { %91 = vst.msk [vmem:[#allocation2] sm:$0xff] %vm19_vm0, %v88_v9  ;;  %v89_v12 = vadd.f32 %v84_v11, %v23_v8  ;;  %v127_v13 = vpop.f32.mrb[3].mxu0 }
  0xe1   :  { %92 = vst.msk [vmem:[#allocation2 + $0x8] sm:$0xff] %vm19_vm0, %v89_v12 }
  0xe6   :  { %v96_v15 = vld [vmem:[#allocation2] sm:$0xff] }
  0xe7   :  { %v105_v16 = vadd.f32 %v116_v14, %v96_v15 }
  0xe8   :  { %v97_v17 = vld [vmem:[#allocation2 + $0x8] sm:$0xff] }
  0xe9   :  { %107 = vst.msk [vmem:[%s184_s3] sm:$0xff] %vm19_vm0, %v105_v16  ;;  %v106_v18 = vadd.f32 %v116_v14, %v97_v17 }
  0xeb   :  { %108 = vst.msk [vmem:[%s184_s3 + $0x8] sm:$0xff] %vm19_vm0, %v106_v18 }

// kernel: decoder_layer.13
= control target key start
LH: loop header
LB: loop body
LE: loop exit
PB: predicated region body
PF: predicated region fallthrough
CT: control target
= control target key end

     0   :  { %10 = vsyncpa [#allocation3], 0  ;;  %s1259_s0 = inlined_call_operand.vmem [shape: f32[2,4,8,8], index: 0, kind: input, shape index: {}]   ;;  %s1260_s1 = inlined_call_operand.vmem [shape: f32[2,4,8,8], index: 1, kind: input, shape index: {}]   ;;  %s1261_s2 = inlined_call_operand.vmem [shape: f32[2,4,8,8], index: 2, kind: input, shape index: {}]   ;;  %s1262_s3 = inlined_call_operand.vmem [shape: f32[2,4,8,8], index: 3, kind: output, shape index: {0}]   ;;  %s1263_s4 = inlined_call_operand.hbm [shape: f32[2,4,8,8], index: 4, kind: output, shape index: {1}]  }
   0x1   :  { %12 = vsyncpa [#allocation3 + $0x1], 0  ;;  %s1085_s15 = smov 0   ;;  %s1087_s16 = smov 0  }
   0x2   :  { %s1089_s17 = smov 0   ;;  %s1091_s18 = smov 0  }
   0x3 LB: > { %s1106_s19 = sadd.s32 4294967295, %s1053_s18   ;;  %s837_s20 = sadd.s32 4294967294, %s1053_s18   ;;  %s1053_s18 = sphi %s1091_s18, %s1269_s18   ;;  %s1049_s17 = sphi %s1089_s17, %s1268_s17   ;;  %s1045_s16 = sphi %s1087_s16, %s1267_s16   ;;  %s1041_s15 = sphi %s1085_s15, %s1266_s15  }
   0x4   : > { %s1110_s21 = sadd.s32 1, %s1053_s18   ;;  %s129_s22 = sadd.s32 1, %s1049_s17 }
   0x5   : > { %s126_s23 = ssub.s32 %s1053_s18, %s1110_s21  ;;  %p139_p0 = scmp.ne.s32.totalorder %s1049_s17, %s1045_s16 }
   0x6   : > { %p127_p1 = scmp.eq.s32.totalorder %s126_s23, 0  ;;  %p140_p2 = scmp.eq.s32.totalorder %s1106_s19, 1 }
   0x7   : > { %p145_p3 = scmp.ne.s32.totalorder %s1045_s16, %s1041_s15  ;;  %p146_p4 = scmp.eq.s32.totalorder %s837_s20, 1 }
   0x8   : > { %s1121_s24 = scalar_select %p127_p1, %s1049_s17, %s129_s22  }
   0x9   : > { %p1123_p5 = por %p140_p2, %p139_p0  ;;  %p1127_p6 = por %p146_p4, %p145_p3 }
   0xa   : > { %p840_p7 = scmp.ge.s32.totalorder %s1053_s18, 1  ;;  %p188_p8 = scmp.lt.s32.totalorder %s1053_s18, 3 }
   0xc   : > { %p189_p9 = pnand %p840_p7, %p188_p8 }
   0xd   : > { %p229_p10 = scmp.lt.s32.totalorder (!%p189_p9), %s1106_s19, 1  ;;  %v1055_v0 = vmov (!%p189_p9), 0.0   ;;  %vm1056_vm0 = vmmov (!%p189_p9), 0   ;;  %vm278_vm1 = vcmask (!%p189_p9), 64512   ;;  %vm518_vm2 = vcmask (!%p189_p9), 1043456   ;;  %s226_s12 = sand.u32 (!%p189_p9), 1, %s1045_s16  }
   0xe   : > { %192 = sbr.rel (%p189_p9) target bundleno = 791 (0x317), region = 32  ;;  %884 = vmatprep.subr.bf16.mxu0 (!%p189_p9), %v1055_v0  ;;  %890 = vmatprep.subr.bf16.mxu1 (!%p189_p9), %v1055_v0  ;;  %s841_s13 = sshll.u32 (!%p189_p9), %s226_s12, 5 }
   0xf   : > { %886 = vmatprep.mubr.msk.bf16.mxu0 (!%p189_p9), %vm1056_vm0, %v1055_v0  ;;  %892 = vmatprep.mubr.msk.bf16.mxu1 (!%p189_p9), %vm1056_vm0, %v1055_v0  ;;  %s228_s14 = scalar_lea.vmem (!%p189_p9), [#allocation2], %s841_s13  ;;  %s867_s20 = sshll.u32 (!%p189_p9), %s1106_s19, 9 }
  0x10   : > { %s726_s22 = sshll.u32 (!%p189_p9), %s228_s14, 4  ;;  %s1204_s29 = scalar_lea.hbm (!%p189_p9), %s1263_s4, %s867_s20  ;;  %s1206_s22 = int_to_ptr.vmem [resolvable:$true] %s726_s22 }
  0x11   : > { %s1210_s30 = scalar_lea.sflag (!%p189_p9), [#allocation3], %s226_s12 }
  0x15   : > { %s230_s27 = scalar_select %p229_p10, %s1106_s19, 1 }
  0x16   : > { %s1057_s19 = smov [#allocation2]  }
  0x17   : > { %s1141_s28 = sshll.u32 %s230_s27, 5  ;;  %s995_s6 = sshll.u32 %s1057_s19, 4  ;;  %s996_s6 = int_to_ptr.vmem [resolvable:$false] %s995_s6 }
  0x18   : > { %s238_s5 = scalar_lea.vmem %s1260_s1, %s1141_s28  ;;  %s233_s8 = scalar_lea.vmem %s1259_s0, %s1141_s28 }
  0x19   : > { %v262_v1 = vld [vmem:[%s238_s5] sm:$0xff]  ;;  %v263_v2 = vld [vmem:[%s238_s5 + $0x8] sm:$0xff]  ;;  %v264_v7 = vld [vmem:[%s238_s5 + $0x10] sm:$0xff]  ;;  %s243_s11 = scalar_lea.vmem %s1261_s2, %s1141_s28  ;;  %s997_s7 = scalar_lea.vmem %s996_s6, 1024 }
  0x1a   : > { %v250_v3 = vld [vmem:[%s233_s8] sm:$0xff]  ;;  %v266_v4 = vpack.c.bf16 %v262_v1, %v262_v1  ;;  %v267_v5 = vpack.c.bf16 %v263_v2, %v263_v2  ;;  %v251_v6 = vld [vmem:[%s233_s8 + $0x8] sm:$0xff]  ;;  %v265_v8 = vld [vmem:[%s238_s5 + $0x18] sm:$0xff]  ;;  %v268_v13 = vpack.c.bf16 %v264_v7, %v264_v7  ;;  %s991_s5 = scalar_lea.vmem %s1206_s22, 512  ;;  %p998_p0 = scmp.lt.s32.totalorder %s1206_s22, %s996_s6 }
  0x1b   : > { %v254_v11 = vmul.f32 0.35355338, %v250_v3  ;;  %v255_v12 = vmul.f32 0.35355338, %v251_v6  ;;  %v269_v14 = vpack.c.bf16 %v265_v8, %v265_v8  ;;  %v252_v17 = vld [vmem:[%s233_s8 + $0x10] sm:$0xff]  ;;  %v253_v18 = vld [vmem:[%s233_s8 + $0x18] sm:$0xff]  ;;  %p992_p11 = scmp.ne.s32.totalorder %s1206_s22, %s991_s5  ;;  %p999_p1 = scmp.lt.s32.totalorder %s997_s7, %s991_s5 }
  0x1c   : > { %v283_v9 = vsel %vm278_vm1, %v266_v4, 0  ;;  %v329_v10 = vsel %vm278_vm1, %v267_v5, 0  ;;  %v375_v19 = vsel %vm278_vm1, %v268_v13, 0  ;;  %v256_v21 = vmul.f32 0.35355338, %v252_v17  ;;  %v270_v2 = vld [vmem:[%s243_s11] sm:$0xff] }
  0x1d   : > { %885 = vmatpush3.bf16.xpose.msra.mxu0 %v283_v9  ;;  %891 = vmatpush3.bf16.xpose.msra.mxu1 %v329_v10  ;;  %v258_v15 = vpack.c.bf16 %v254_v11, %v254_v11  ;;  %v259_v16 = vpack.c.bf16 %v255_v12, %v255_v12  ;;  %v421_v20 = vsel %vm278_vm1, %v269_v14, 0  ;;  %v257_v22 = vmul.f32 0.35355338, %v253_v18  ;;  %v271_v5 = vld [vmem:[%s243_s11 + $0x8] sm:$0xff]  ;;  %v272_v8 = vld [vmem:[%s243_s11 + $0x10] sm:$0xff]  ;;  %v273_v11 = vld [vmem:[%s243_s11 + $0x18] sm:$0xff]  ;;  %p993_p12 = pnand %p992_p11, %p1123_p5  ;;  %p1000_p2 = por %p999_p1, %p998_p0 }
  0x1e   : > { %896 = vmatprep.subr.bf16.mxu0 %v1055_v0  ;;  %902 = vmatprep.subr.bf16.mxu1 %v1055_v0  ;;  %v260_v23 = vpack.c.bf16 %v256_v21, %v256_v21  ;;  %v274_v3 = vpack.c.bf16 %v270_v2, %v270_v2  ;;  %v275_v6 = vpack.c.bf16 %v271_v5, %v271_v5 }
  0x1f   : > { %v261_v24 = vpack.c.bf16 %v257_v22, %v257_v22  ;;  %v276_v9 = vpack.c.bf16 %v272_v8, %v272_v8  ;;  %v277_v12 = vpack.c.bf16 %v273_v11, %v273_v11  ;;  %p994_p13 = pneg %p993_p12 }
  0x20   : > { %v520_v4 = vsel %vm518_vm2, %v274_v3, 0  ;;  %v566_v7 = vsel %vm518_vm2, %v275_v6, 0 }
  0x21   : > { %v612_v10 = vsel %vm518_vm2, %v276_v9, 0  ;;  %v658_v13 = vsel %vm518_vm2, %v277_v12, 0  ;;  %p1001_p3 = pnand %p1000_p2, %p994_p13 }
  0x24   : > { %887 = vmatmul.mubr.msk.bf16.vlgmr.msra.gmra.mrb[0].mxu0 %vm278_vm1, %v258_v15  ;;  %893 = vmatmul.mubr.msk.bf16.vlgmr.msra.gmra.mrb[0].mxu1 %vm278_vm1, %v259_v16 }
  0x25   : > { %897 = vmatpush3.bf16.xpose.msra.mxu0 %v375_v19  ;;  %903 = vmatpush3.bf16.xpose.msra.mxu1 %v421_v20 }
  0x26   : > { %898 = vmatprep.mubr.msk.bf16.mxu0 %vm1056_vm0, %v1055_v0  ;;  %904 = vmatprep.mubr.msk.bf16.mxu1 %vm1056_vm0, %v1055_v0 }
  0x27   : > { %908 = vmatprep.subr.bf16.mxu0 %v1055_v0  ;;  %914 = vmatprep.subr.bf16.mxu1 %v1055_v0 }
  0x2c   : > { %899 = vmatmul.mubr.msk.bf16.vlgmr.msra.gmra.mrb[4].mxu0 %vm278_vm1, %v260_v23  ;;  %905 = vmatmul.mubr.msk.bf16.vlgmr.msra.gmra.mrb[4].mxu1 %vm278_vm1, %v261_v24 }
  0x2d   : > { %910 = vmatprep.mubr.msk.bf16.mxu0 %vm1056_vm0, %v1055_v0  ;;  %916 = vmatprep.mubr.msk.bf16.mxu1 %vm1056_vm0, %v1055_v0 }
  0x2e   : > { %909 = vmatpush3.bf16.msra.mxu0 %v520_v4  ;;  %915 = vmatpush3.bf16.msra.mxu1 %v566_v7 }
  0x2f   : > { %920 = vmatprep.subr.bf16.mxu0 %v1055_v0  ;;  %926 = vmatprep.subr.bf16.mxu1 %v1055_v0 }
  0xf7   : > { %v319_v25 = vpop.f32.mrb[0].mxu0  ;;  %v365_v26 = vpop.f32.mrb[0].mxu1 }
  0xf8   : > { %v888_v27 = vpop.f32.mrb[1].mxu0  ;;  %v463_v28 = vsel %vm278_vm1, %v319_v25, -inf  ;;  %v894_v29 = vpop.f32.mrb[1].mxu1  ;;  %v466_v34 = vsel %vm278_vm1, %v365_v26, -inf }
  0xf9   : > { %464 = vmax.xlane.f32.xlu0 %v463_v28  ;;  %v322_v30 = vpop.f32.mrb[2].mxu0  ;;  %v368_v31 = vpop.f32.mrb[2].mxu1 }
  0xfa   : > { %v889_v32 = vpop.f32.mrb[3].mxu0  ;;  %v895_v33 = vpop.f32.mrb[3].mxu1 }
  0xfd   : > { %467 = vmax.xlane.f32.xlu0 %v466_v34 }
  0xff   : > { %v411_v35 = vpop.f32.mrb[4].mxu0  ;;  %v457_v36 = vpop.f32.mrb[4].mxu1 }
 0x100   : > { %v900_v37 = vpop.f32.mrb[5].mxu0  ;;  %v469_v38 = vsel %vm278_vm1, %v411_v35, -inf  ;;  %v906_v39 = vpop.f32.mrb[5].mxu1  ;;  %v472_v44 = vsel %vm278_vm1, %v457_v36, -inf }
 0x101   : > { %470 = vmax.xlane.f32.xlu1 %v469_v38  ;;  %v414_v40 = vpop.f32.mrb[6].mxu0  ;;  %v460_v41 = vpop.f32.mrb[6].mxu1 }
 0x102   : > { %v901_v42 = vpop.f32.mrb[7].mxu0  ;;  %v907_v43 = vpop.f32.mrb[7].mxu1 }
 0x105   : > { %473 = vmax.xlane.f32.xlu1 %v472_v44 }
 0x186   : > { %v465_v45 = vpop.xlane.xlu0 %464 }
 0x187   : > { %v475_v46 = vsub.f32 %v319_v25, %v465_v45 }
 0x189   : > { %v479_v47 = vmul.f32 1.442695, %v475_v46 }
 0x18a   : > { %v468_v48 = vpop.xlane.xlu0 %467 }
 0x18b   : > { %975 = vpow2.f32 %v479_v47  ;;  %v476_v49 = vsub.f32 %v365_v26, %v468_v48 }
 0x18d   : > { %v481_v50 = vmul.f32 1.442695, %v476_v49 }
 0x18e   : > { %v471_v51 = vpop.xlane.xlu1 %470 }
 0x18f   : > { %977 = vpow2.f32 %v481_v50  ;;  %v477_v52 = vsub.f32 %v411_v35, %v471_v51 }
 0x191   : > { %v483_v53 = vmul.f32 1.442695, %v477_v52 }
 0x192   : > { %v474_v54 = vpop.xlane.xlu1 %473 }
 0x193   : > { %979 = vpow2.f32 %v483_v53  ;;  %v478_v55 = vsub.f32 %v457_v36, %v474_v54 }
 0x195   : > { %v976_v56 = vpop.eup %975  ;;  %v485_v57 = vmul.f32 1.442695, %v478_v55 }
 0x196   : > { %v487_v58 = vsel %vm278_vm1, %v976_v56, 0.0 }
 0x197   : > { %981 = vpow2.f32 %v485_v57  ;;  %488 = vadd.xlane.f32.xlu0 %v487_v58 }
 0x199   : > { %v978_v59 = vpop.eup %977 }
 0x19a   : > { %v490_v60 = vsel %vm278_vm1, %v978_v59, 0.0 }
 0x19b   : > { %491 = vadd.xlane.f32.xlu1 %v490_v60 }
 0x19d   : > { %v980_v61 = vpop.eup %979 }
 0x19e   : > { %v493_v62 = vsel %vm278_vm1, %v980_v61, 0.0 }
 0x19f   : > { %494 = vadd.xlane.f32.xlu0 %v493_v62 }
 0x1a1   : > { %v982_v63 = vpop.eup %981 }
 0x1a2   : > { %v496_v1 = vsel %vm278_vm1, %v982_v63, 0.0 }
 0x1a3   : > { %497 = vadd.xlane.f32.xlu1 %v496_v1 }
 0x224   : > { %v489_v14 = vpop.xlane.xlu0 %488 }
 0x225   : > { %983 = vrcp.f32 %v489_v14 }
 0x228   : > { %v492_v15 = vpop.xlane.xlu1 %491 }
 0x229   : > { %985 = vrcp.f32 %v492_v15 }
 0x22c   : > { %v495_v16 = vpop.xlane.xlu0 %494 }
 0x22d   : > { %987 = vrcp.f32 %v495_v16 }
 0x22f   : > { %v984_v17 = vpop.eup %983 }
 0x230   : > { %v503_v18 = vmul.f32 %v984_v17, %v976_v56  ;;  %v498_v19 = vpop.xlane.xlu1 %497 }
 0x231   : > { %989 = vrcp.f32 %v498_v19 }
 0x232   : > { %507 = vst.msk [vmem:[%s228_s14] sm:$0xff] %vm278_vm1, %v503_v18  ;;  %v511_v20 = vpack.c.bf16 %v503_v18, %v503_v18 }
 0x233   : > { %v986_v21 = vpop.eup %985 }
 0x234   : > { %v504_v22 = vmul.f32 %v986_v21, %v978_v59  ;;  %911 = vmatmul.mubr.msk.bf16.vlgmr.msra.gmra.mrb[8].mxu0 %vm278_vm1, %v511_v20 }
 0x235   : > { %921 = vmatpush3.bf16.msra.mxu0 %v612_v10  ;;  %922 = vmatprep.mubr.msk.bf16.mxu0 %vm1056_vm0, %v1055_v0 }
 0x236   : > { %508 = vst.msk [vmem:[%s228_s14 + $0x8] sm:$0xff] %vm278_vm1, %v504_v22  ;;  %v512_v23 = vpack.c.bf16 %v504_v22, %v504_v22 }
 0x237   : > { %v988_v24 = vpop.eup %987 }
 0x238   : > { %v505_v25 = vmul.f32 %v988_v24, %v980_v61  ;;  %917 = vmatmul.mubr.msk.bf16.vlgmr.msra.gmra.mrb[8].mxu1 %vm278_vm1, %v512_v23 }
 0x239   : > { %927 = vmatpush3.bf16.msra.mxu1 %v658_v13  ;;  %928 = vmatprep.mubr.msk.bf16.mxu1 %vm1056_vm0, %v1055_v0 }
 0x23a   : > { %509 = vst.msk [vmem:[%s228_s14 + $0x10] sm:$0xff] %vm278_vm1, %v505_v25  ;;  %v513_v26 = vpack.c.bf16 %v505_v25, %v505_v25 }
 0x23b   : > { %v990_v27 = vpop.eup %989 }
 0x23c   : > { %v506_v28 = vmul.f32 %v990_v27, %v982_v63  ;;  %923 = vmatmul.mubr.msk.bf16.vlgmr.msra.gmra.mrb[12].mxu0 %vm278_vm1, %v513_v26 }
 0x23e   : > { %510 = vst.msk [vmem:[%s228_s14 + $0x18] sm:$0xff] %vm278_vm1, %v506_v28  ;;  %v514_v29 = vpack.c.bf16 %v506_v28, %v506_v28 }
 0x240   : > { %929 = vmatmul.mubr.msk.bf16.vlgmr.msra.gmra.mrb[12].mxu1 %vm278_vm1, %v514_v29 }
 0x241   : > { %1004 = shalt.err (!%p1001_p3)
}
 0x242   : > { %s1005_s8 = scalar_lea.hbm %s1204_s29, 512  ;;  %s1009_s11 = scalar_lea.hbm %s1263_s4, 1024 }
 0x243   : > { %p1006_p4 = scmp.ne.s32.totalorder %s1204_s29, %s1005_s8  ;;  %p1010_p9 = scmp.lt.u32.totalorder %s1204_s29, %s1263_s4 }
 0x244   : > { %p1011_p10 = scmp.lt.u32.totalorder %s1009_s11, %s1005_s8  ;;  %p1013_p12 = scmp.lt.u32.totalorder %s1005_s8, %s1204_s29 }
 0x245   : > { %p1007_p7 = pnand %p1006_p4, %p1123_p5 }
 0x246   : > { %p1012_p11 = por %p1011_p10, %p1010_p9 }
 0x247   : > { %p1008_p8 = pneg %p1007_p7 }
 0x248   : > { %p1014_p13 = por %p1013_p12, %p1012_p11 }
 0x24a   : > { %p1015_p0 = pnand %p1014_p13, %p1008_p8 }
 0x24c   : > { %1018 = shalt.err (!%p1015_p0)
}
 0x24d   : > { %s1058_s14 = smov 128   ;;  %s1059_s20 = smov 8  }
 0x24e   : > { %932 = dma.vmem_to_hbm [thread:$0]  (%p1123_p5), %s1206_s22, 512, %s1204_s29, %s1210_s30, %s1058_s14, %s1058_s14, %s1059_s20  }
 0x24f   : > { %s248_s5 = scalar_lea.vmem %s1262_s3, %s1141_s28 }
 0x307   : > { %v556_v0 = vpop.f32.mrb[8].mxu0 }
 0x308   : > { %700 = vst.msk [vmem:[%s248_s5] sm:$0xff] %vm278_vm1, %v556_v0  ;;  %v912_v30 = vpop.f32.mrb[9].mxu0 }
 0x309   : > { %v559_v31 = vpop.f32.mrb[10].mxu0 }
 0x30a   : > { %v913_v32 = vpop.f32.mrb[11].mxu0 }
 0x30b   : > { %v602_v33 = vpop.f32.mrb[8].mxu1 }
 0x30c   : > { %701 = vst.msk [vmem:[%s248_s5 + $0x8] sm:$0xff] %vm278_vm1, %v602_v33  ;;  %v918_v34 = vpop.f32.mrb[9].mxu1 }
 0x30d   : > { %v605_v35 = vpop.f32.mrb[10].mxu1 }
 0x30e   : > { %v919_v36 = vpop.f32.mrb[11].mxu1 }
 0x30f   : > { %v648_v37 = vpop.f32.mrb[12].mxu0 }
 0x310   : > { %702 = vst.msk [vmem:[%s248_s5 + $0x10] sm:$0xff] %vm278_vm1, %v648_v37  ;;  %v924_v38 = vpop.f32.mrb[13].mxu0 }
 0x311   : > { %v651_v39 = vpop.f32.mrb[14].mxu0 }
 0x312   : > { %v925_v40 = vpop.f32.mrb[15].mxu0 }
 0x313   : > { %v694_v41 = vpop.f32.mrb[12].mxu1 }
 0x314   : > { %703 = vst.msk [vmem:[%s248_s5 + $0x18] sm:$0xff] %vm278_vm1, %v694_v41  ;;  %v930_v42 = vpop.f32.mrb[13].mxu1 }
 0x315   : > { %v697_v43 = vpop.f32.mrb[14].mxu1 }
 0x316   : > { %v931_v44 = vpop.f32.mrb[15].mxu1 }
 0x317 PF: > { %p938_p5 = scmp.ge.s32.totalorder %s1053_s18, 2  ;;  %s749_s25 = sand.u32 1, %s1041_s15  }
 0x318   : > { %s750_s28 = scalar_lea.sflag [#allocation3], %s749_s25 }
 0x319   : > { %p935_p1 = pnand %p938_p5, %p1127_p6 }
 0x31b   : > { %1036 = dma.done.wait (!%p935_p1), %s750_s28, 512  }
 0x31c   : > { %1038 = vsyncadd (!%p935_p1), %s750_s28, 4294966784  ;;  %p15_p2 = scmp.ge.s32.totalorder %s1110_s21, 4   ;;  %s1266_s15 = smov %s1045_s16 }
 0x31d   : > { %s1267_s16 = smov %s1049_s17  ;;  %s1268_s17 = smov %s1121_s24 }
 0x31e   : > { %s1269_s18 = smov %s1110_s21  ;;  %17 = sbr.rel (!%p15_p2) target bundleno = 3 (0x3), region = 85 }
 0x325   :  { %755 = vsyncpa [#allocation3], 1 }
 0x326   :  { %757 = vsyncpa [#allocation3 + $0x1], 1 }

// kernel: decoder_layer.15
= control target key start
LH: loop header
LB: loop body
LE: loop exit
PB: predicated region body
PF: predicated region fallthrough
CT: control target
= control target key end

     0   :  { %vm32_vm0 = vcmask 261120   ;;  %s464_s0 = inlined_call_operand.vmem [shape: f32[16,32], index: 0, kind: input, shape index: {}]   ;;  %s465_s1 = inlined_call_operand.vmem [shape: f32[1,32], index: 1, kind: input, shape index: {}]   ;;  %s466_s2 = inlined_call_operand.vmem [shape: f32[1,32], index: 2, kind: input, shape index: {}]   ;;  %s467_s3 = inlined_call_operand.vmem [shape: bf16[32,64], index: 3, kind: input, shape index: {}]   ;;  %s468_s4 = inlined_call_operand.vmem [shape: f32[1,64], index: 4, kind: input, shape index: {}]   ;;  %s469_s5 = inlined_call_operand.vmem [shape: bf16[64,32], index: 5, kind: input, shape index: {}]   ;;  %s470_s6 = inlined_call_operand.vmem [shape: f32[1,32], index: 6, kind: input, shape index: {}]   ;;  %s471_s7 = inlined_call_operand.hbm [shape: f32[16,32], index: 7, kind: output, shape index: {}]  }
   0x1   :  { %v398_v0 = vld [vmem:[%s464_s0] sm:$0xff]  ;;  %v403_v1 = vld [vmem:[%s464_s0 + $0x8] sm:$0xff] }
   0x2   :  { %v38_v2 = vsel %vm32_vm0, %v398_v0, 0.0  ;;  %v41_v3 = vsel %vm32_vm0, %v403_v1, 0.0 }
   0x3   :  { %39 = vadd.xlane.f32.xlu0 %v38_v2 }
   0x4   :  { %12 = vsyncpa [#allocation4], 0  ;;  %v316_v14 = vld [vmem:[%s467_s3] sm:$0xff]   ;;  %v350_v15 = vmov 0.0   ;;  %v317_v16 = vld [vmem:[%s467_s3 + $0x8] sm:$0xff]   ;;  %vm351_vm1 = vmmov 0  }
   0x5   :  { %291 = vmatprep.subr.bf16.mxu0 %v350_v15  ;;  %33 = vst.msk [vmem:[#allocation2] sm:$0xff] %vm32_vm0, %v350_v15  ;;  %34 = vst.msk [vmem:[#allocation2 + $0x8] sm:$0xff] %vm32_vm0, %v350_v15  ;;  %299 = vmatprep.subr.bf16.mxu1 %v350_v15  ;;  %v318_v17 = vld [vmem:[%s469_s5] sm:$0xff]   ;;  %v319_v18 = vld [vmem:[%s469_s5 + $0x8] sm:$0xff]   ;;  %vm188_vm2 = vcmask 523264  }
   0x6   :  { %292 = vmatpush3.bf16.msra.mxu0 %v316_v14  ;;  %295 = vmatprep.mubr.msk.bf16.mxu0 %vm351_vm1, %v350_v15  ;;  %v271_v27 = vld [vmem:[%s465_s1] ss:$0 sm:$0xff]  ;;  %v320_v36 = vld [vmem:[%s469_s5 + $0x10] sm:$0xff]   ;;  %v321_v37 = vld [vmem:[%s469_s5 + $0x18] sm:$0xff]   ;;  %s352_s5 = smov [#allocation3]  }
   0x7   :  { %42 = vadd.xlane.f32.xlu0 %v41_v3  ;;  %293 = vmatprep.subr.bf16.mxu0 %v350_v15  ;;  %v272_v31 = vld [vmem:[%s466_s2] ss:$0 sm:$0xff]  ;;  %s260_s20 = sshll.u32 %s352_s5, 4  ;;  %s261_s20 = int_to_ptr.vmem [resolvable:$true] %s260_s20 }
   0x8   :  { %307 = vmatprep.mubr.msk.bf16.mxu1 %vm351_vm1, %v350_v15  ;;  %300 = vmatpush3.bf16.msra.mxu1 %v318_v17  ;;  %v273_v38 = vld [vmem:[%s468_s4] ss:$0 sm:$0xff]  ;;  %s326_s21 = scalar_lea.vmem %s261_s20, 256  ;;  %p331_p1 = scmp.lt.s32.totalorder %s261_s20, %s261_s20 }
   0x9   :  { %301 = vmatprep.subr.bf16.mxu1 %v350_v15  ;;  %v282_v56 = vld [vmem:[%s470_s6] ss:$0 sm:$0xff]  ;;  %p327_p0 = scmp.ne.s32.totalorder %s261_s20, %s326_s21  ;;  %p332_p2 = scmp.lt.s32.totalorder %s326_s21, %s326_s21 }
   0xa   :  { %294 = vmatpush3.bf16.msra.mxu0 %v317_v16 }
   0xb   :  { %p333_p3 = por %p332_p2, %p331_p1 }
   0xc   :  { %302 = vmatpush3.bf16.msra.mxu1 %v319_v18  ;;  %v153_v48 = vld [vmem:[#allocation2] sm:$0xff]  ;;  %v154_v50 = vld [vmem:[#allocation2 + $0x8] sm:$0xff] }
   0xd   :  { %303 = vmatprep.subr.bf16.mxu1 %v350_v15  ;;  %p334_p4 = pnand %p333_p3, %p327_p0 }
  0x10   :  { %304 = vmatpush3.bf16.msra.mxu1 %v320_v36 }
  0x11   :  { %305 = vmatprep.subr.bf16.mxu1 %v350_v15 }
  0x14   :  { %306 = vmatpush3.bf16.msra.mxu1 %v321_v37 }
  0x90   :  { %v40_v4 = vpop.xlane.xlu0 %39 }
  0x91   :  { %v45_v5 = vmul.f32 0.03125, %v40_v4 }
  0x93   :  { %v47_v6 = vsub.f32 %v398_v0, %v45_v5 }
  0x94   :  { %v43_v7 = vpop.xlane.xlu0 %42 }
  0x95   :  { %v46_v8 = vmul.f32 0.03125, %v43_v7  ;;  %v49_v9 = vmul.f32 %v47_v6, %v47_v6 }
  0x97   :  { %v48_v10 = vsub.f32 %v403_v1, %v46_v8  ;;  %v51_v11 = vsel %vm32_vm0, %v49_v9, 0.0 }
  0x98   :  { %52 = vadd.xlane.f32.xlu1 %v51_v11 }
  0x99   :  { %v50_v12 = vmul.f32 %v48_v10, %v48_v10 }
  0x9b   :  { %v54_v13 = vsel %vm32_vm0, %v50_v12, 0.0 }
  0x9c   :  { %55 = vadd.xlane.f32.xlu1 %v54_v13 }
 0x125   :  { %v53_v19 = vpop.xlane.xlu1 %52 }
 0x126   :  { %v57_v20 = vmul.f32 0.03125, %v53_v19 }
 0x128   :  { %v59_v21 = vadd.f32 1e-05, %v57_v20 }
 0x129   :  { %v56_v22 = vpop.xlane.xlu1 %55 }
 0x12a   :  { %322 = vrsqrt.f32 %v59_v21  ;;  %v58_v23 = vmul.f32 0.03125, %v56_v22 }
 0x12c   :  { %v60_v24 = vadd.f32 1e-05, %v58_v23 }
 0x12e   :  { %324 = vrsqrt.f32 %v60_v24 }
 0x134   :  { %v323_v25 = vpop.eup %322 }
 0x135   :  { %v63_v26 = vmul.f32 %v323_v25, %v47_v6 }
 0x137   :  { %v72_v30 = vmul.f32 %v271_v27, %v63_v26 }
 0x138   :  { %v325_v28 = vpop.eup %324 }
 0x139   :  { %v64_v29 = vmul.f32 %v325_v28, %v48_v10  ;;  %v81_v33 = vadd.f32 %v272_v31, %v72_v30 }
 0x13b   :  { %v73_v32 = vmul.f32 %v271_v27, %v64_v29 }
 0x13d   :  { %v82_v34 = vadd.f32 %v272_v31, %v73_v32 }
 0x13f   :  { %v83_v35 = vpack.c.bf16 %v82_v34, %v81_v33 }
 0x141   :  { %296 = vmatmul.mubr.msk.bf16.vlgmr.msra.gmra.mrb[0].mxu0 %vm32_vm0, %v83_v35 }
 0x214   :  { %v144_v39 = vpop.f32.mrb[0].mxu0 }
 0x215   :  { %v145_v40 = vadd.f32 %v273_v38, %v144_v39  ;;  %v297_v41 = vpop.f32.mrb[1].mxu0 }
 0x216   :  { %v147_v42 = vpop.f32.mrb[2].mxu0 }
 0x217   :  { %v148_v43 = vadd.f32 %v273_v38, %v147_v42  ;;  %v298_v44 = vpop.f32.mrb[3].mxu0  ;;  %v151_v45 = vmax.f32 %v145_v40, 0.0 }
 0x219   :  { %v152_v46 = vmax.f32 %v148_v43, 0.0 }
 0x21b   :  { %v155_v47 = vpack.c.bf16 %v152_v46, %v151_v45 }
 0x21d   :  { %308 = vmatmul.mubr.msk.bf16.vlgmr.msra.gmra.mrb[0].mxu1 %vm188_vm2, %v155_v47 }
 0x2f0   :  { %v226_v49 = vpop.f32.mrb[0].mxu1 }
 0x2f1   :  { %v233_v51 = vadd.f32 %v226_v49, %v153_v48  ;;  %v309_v52 = vpop.f32.mrb[1].mxu1 }
 0x2f2   :  { %v229_v53 = vpop.f32.mrb[2].mxu1 }
 0x2f3   :  { %235 = vst.msk [vmem:[#allocation2] sm:$0xff] %vm32_vm0, %v233_v51  ;;  %v234_v54 = vadd.f32 %v229_v53, %v154_v50  ;;  %v310_v55 = vpop.f32.mrb[3].mxu1 }
 0x2f5   :  { %236 = vst.msk [vmem:[#allocation2 + $0x8] sm:$0xff] %vm32_vm0, %v234_v54 }
 0x2fa   :  { %v240_v57 = vld [vmem:[#allocation2] sm:$0xff] }
 0x2fb   :  { %v249_v58 = vadd.f32 %v282_v56, %v240_v57 }
 0x2fc   :  { %v241_v59 = vld [vmem:[#allocation2 + $0x8] sm:$0xff] }
 0x2fd   :  { %v250_v60 = vadd.f32 %v282_v56, %v241_v59  ;;  %v251_v61 = vadd.f32 %v249_v58, %v398_v0 }
 0x2ff   :  { %v252_v62 = vadd.f32 %v250_v60, %v403_v1  ;;  %253 = vst.msk [vmem:[#allocation3] sm:$0xff] %vm32_vm0, %v251_v61 }
 0x301   :  { %254 = vst.msk [vmem:[#allocation3 + $0x8] sm:$0xff] %vm32_vm0, %v252_v62 }
 0x302   :  { %337 = shalt.err (!%p334_p4)
}
 0x303   :  { %s338_s23 = scalar_lea.hbm %s471_s7, 256 }
 0x304   :  { %p339_p5 = scmp.ne.s32.totalorder %s471_s7, %s338_s23  ;;  %p342_p6 = scmp.lt.u32.totalorder %s338_s23, %s471_s7 }
 0x306   :  { %p344_p7 = pnand %p342_p6, %p339_p5 }
 0x308   :  { %347 = shalt.err (!%p344_p7)
}
 0x309   :  { %s353_s0 = smov 128   ;;  %s354_s28 = smov 8  }
 0x30a   :  { %266 = dma.vmem_to_hbm [thread:$0]  %s261_s20, 256, %s471_s7, [#allocation4], %s353_s0, %s353_s0, %s354_s28  }
 0x30b   :  { %348 = dma.done.wait [#allocation4], 256  }
 0x30c   :  { %349 = vsyncadd [#allocation4], 4294967040 }
 0x30d   :  { %270 = vsyncpa [#allocation4], 1 }

</bundles_post_ra>
